<compile_context>
chip_gen: v7x
topology: tpu7x:2x2x1
jax: 0.10.0
libtpu: 0.0.40
codegen_flags: <defaults>
</compile_context>

<pallas_src>
import functools

import jax
import jax.numpy as jnp
from jax import lax
from jax.experimental import pallas as pl
from jax.experimental.pallas import tpu as pltpu

HIDDEN = 50          # nn.LSTM(hidden_size=50)
HP = 128             # hidden dim padded to one full lane group
GATES = 4
GP = GATES * HP      # 512: each gate padded to its own 128-lane block


def _round_up(n, m):
    return ((n + m - 1) // m) * m


def lstm_linear_kernel(x_ref, w_ih_ref, b_ref, w_hh_ref, w_lin_ref, b_lin_ref,
                       out_ref, h_scr, c_scr, hist_scr, *, unroll):
    """One (batch-tile, time-chunk) grid step of LSTM(1->50) + Linear(50->1).

    x_ref:     (B_TILE, T_TILE)  raw scalar inputs, batch on sublanes / time on lanes
    w_ih_ref:  (1, 512)          input->gates weights, gate-padded
    b_ref:     (1, 512)          b_ih + b_hh, gate-padded
    w_hh_ref:  (128, 512)        hidden->gates weights, gate-padded
    w_lin_ref: (1, 1, 128)       linear.weight, zero-padded
    b_lin_ref: (1,)              linear.bias (SMEM scalar)
    out_ref:   (T_TILE, B_TILE)  per-timestep scalar output for this chunk
    h_scr/c_scr: (B_TILE, 128)   persistent carry across time chunks
    hist_scr:  (T_TILE, B_TILE, 128)  chunk-local hidden history
    """
    _, t_tile = x_ref.shape

    # Reset the carried state at the start of each batch tile's time sweep.
    @pl.when(pl.program_id(1) == 0)
    def _():
        h_scr[...] = jnp.zeros_like(h_scr)
        c_scr[...] = jnp.zeros_like(c_scr)

    w_ih = w_ih_ref[...]                                       # (1, 512)
    b_g = b_ref[...]                                           # (1, 512)
    w_hh = w_hh_ref[...]                                       # (128, 512)
    x_bt = x_ref[...]                                          # (B_TILE, T_TILE)
    lane_t = lax.broadcasted_iota(jnp.int32, (1, t_tile), 1)   # (1, T_TILE)

    def step(t, carry):
        h_prev, c_prev = carry                                 # (B_TILE, 128) each
        # In-kernel pre-gates from raw x: extract column t with a one-hot lane
        # select + lane reduce (keeps batch on sublanes, no relayout needed).
        sel = (lane_t == t).astype(jnp.float32)                # (1, T_TILE)
        x_col = jnp.sum(x_bt * sel, axis=1, keepdims=True)     # (B_TILE, 1)
        pre = x_col * w_ih + b_g                               # (B_TILE, 512)
        gates = jnp.dot(h_prev, w_hh,
                        preferred_element_type=jnp.float32) + pre
        # PyTorch gate order i, f, g, o; each slice is a full 128-lane block.
        i_g = jax.nn.sigmoid(gates[:, 0 * HP:1 * HP])
        f_g = jax.nn.sigmoid(gates[:, 1 * HP:2 * HP])
        g_g = jnp.tanh(gates[:, 2 * HP:3 * HP])
        o_g = jax.nn.sigmoid(gates[:, 3 * HP:4 * HP])
        c_t = f_g * c_prev + i_g * g_g
        h_t = o_g * jnp.tanh(c_t)
        hist_scr[t] = h_t                                      # lane-dense store
        return (h_t, c_t)

    carry = (h_scr[...], c_scr[...])
    carry = lax.fori_loop(0, t_tile, step, carry, unroll=unroll)
    h_scr[...] = carry[0]
    c_scr[...] = carry[1]

    # Fused Linear(50, 1) on this chunk's hidden history (padded lanes of
    # w_lin are zero, so they contribute nothing).
    y = jnp.sum(hist_scr[...] * w_lin_ref[...], axis=-1)       # (T_TILE, B_TILE)
    out_ref[...] = y + b_lin_ref[0]


def _vmem_limit_bytes(t_tile, b_tile):
    """Scoped-VMEM request derived from the tile sizes (2x margin)."""
    f32 = 4
    lanes = lambda n: _round_up(n, 128)
    subl = lambda n: _round_up(n, 8)
    x_blk = subl(b_tile) * lanes(t_tile) * f32
    out_blk = subl(t_tile) * lanes(b_tile) * f32
    hist = t_tile * subl(b_tile) * HP * f32
    epilogue_tmp = hist                       # materialized hist*w_lin product
    weights = (HP * GP + 2 * GP + HP) * f32
    state = 2 * subl(b_tile) * HP * f32
    est = 2 * (x_blk + out_blk) + hist + epilogue_tmp + weights + state
    return int(min(96 * 1024 * 1024, max(16 * 1024 * 1024, 2 * est)))


@functools.partial(jax.jit, static_argnames=("t_tile", "b_tile"))
def mc_classifier_forward(x, params, *, t_tile=None, b_tile=None):
    """x: (B, T, 1) float32, batch_first — matches the PyTorch module."""
    w_ih, w_hh, b_ih, b_hh, lin_w, lin_b = params
    B, T, _ = x.shape
    H, G = HIDDEN, GATES
    f32 = jnp.float32

    # ---- Tile selection ----------------------------------------------------
    if b_tile is None:
        # <=64 rows per core keeps h/c + gates well inside the 64-vreg file.
        b_tile = _round_up(B, 8) if B <= 64 else 64
    b_tile = max(8, _round_up(int(b_tile), 8))
    nb = -(-B // b_tile)
    b_pad = nb * b_tile

    if t_tile is None:
        t_tile = T if T <= 128 else 128
    t_tile = int(t_tile)
    if t_tile >= T:
        t_tile, t_pad, nt = T, T, 1
    else:
        t_tile = max(8, _round_up(t_tile, 8))
        t_pad = _round_up(T, t_tile)
        nt = t_pad // t_tile

    if t_tile <= 32:
        unroll = t_tile            # fully unroll short chunks
    elif t_tile % 8 == 0:
        unroll = 8                 # partial unroll for cross-step scheduling
    elif t_tile % 4 == 0:
        unroll = 4
    else:
        unroll = 1

    # ---- Gate-padded parameter relayout (zero padding => identical math) ---
    w_ih_pad = (jnp.zeros((G, HP), f32)
                .at[:, :H].set(w_ih[:, 0].astype(f32).reshape(G, H))
                .reshape(1, G * HP))
    b_pad_g = (jnp.zeros((G, HP), f32)
               .at[:, :H].set((b_ih + b_hh).astype(f32).reshape(G, H))
               .reshape(1, G * HP))
    # w_hh: (4H, H) -> (128, 512): [i, g*128 + j] = w_hh[g*50 + j, i]
    w_hh_g = jnp.transpose(w_hh.astype(f32).reshape(G, H, H), (2, 0, 1))
    w_hh_pad = (jnp.zeros((HP, G, HP), f32)
                .at[:H, :, :H].set(w_hh_g)
                .reshape(HP, G * HP))
    w_lin_pad = jnp.zeros((1, 1, HP), f32).at[0, 0, :H].set(lin_w[0].astype(f32))
    b_lin = lin_b.astype(f32).reshape(1)

    # ---- x relayout: (B, T, 1) -> (nb, nt, b_tile, t_tile), zero padded -----
    x_bt = x[..., 0].astype(f32)
    x_bt = jnp.pad(x_bt, ((0, b_pad - B), (0, t_pad - T)))
    x_tiled = jnp.transpose(x_bt.reshape(nb, b_tile, nt, t_tile), (0, 2, 1, 3))

    kernel = functools.partial(lstm_linear_kernel, unroll=unroll)
    out = pl.pallas_call(
        kernel,
        out_shape=jax.ShapeDtypeStruct((nb, t_pad, b_tile), f32),
        grid=(nb, nt),
        in_specs=[
            pl.BlockSpec((None, None, b_tile, t_tile), lambda b, t: (b, t, 0, 0)),
            pl.BlockSpec((1, GP), lambda b, t: (0, 0)),
            pl.BlockSpec((1, GP), lambda b, t: (0, 0)),
            pl.BlockSpec((HP, GP), lambda b, t: (0, 0)),
            pl.BlockSpec((1, 1, HP), lambda b, t: (0, 0, 0)),
            pl.BlockSpec(memory_space=pltpu.MemorySpace.SMEM),
        ],
        out_specs=pl.BlockSpec((None, t_tile, b_tile), lambda b, t: (b, t, 0)),
        scratch_shapes=[
            pltpu.VMEM((b_tile, HP), f32),           # h carry (persists over chunks)
            pltpu.VMEM((b_tile, HP), f32),           # c carry
            pltpu.VMEM((t_tile, b_tile, HP), f32),   # chunk-local hidden history
        ],
        compiler_params=pltpu.CompilerParams(
            dimension_semantics=("parallel", "arbitrary"),
            vmem_limit_bytes=_vmem_limit_bytes(t_tile, b_tile),
        ),
    )(x_tiled, w_ih_pad, b_pad_g, w_hh_pad, w_lin_pad, b_lin)

    out = jnp.transpose(out, (0, 2, 1)).reshape(b_pad, t_pad)   # (B_pad, T_pad)
    return out[:B, :T][..., None]                               # (B, T, 1)


def reference_forward(x, params):
    """Pure-JAX reference replicating the PyTorch LSTM + Linear semantics."""
    w_ih, w_hh, b_ih, b_hh, lin_w, lin_b = params
    B, T, _ = x.shape
    H = HIDDEN

    def cell(carry, x_t):
        h, c = carry
        gates = x_t @ w_ih.T + h @ w_hh.T + b_ih + b_hh
        i_g = jax.nn.sigmoid(gates[:, 0:H])
        f_g = jax.nn.sigmoid(gates[:, H:2 * H])
        g_g = jnp.tanh(gates[:, 2 * H:3 * H])
        o_g = jax.nn.sigmoid(gates[:, 3 * H:4 * H])
        c = f_g * c + i_g * g_g
        h = o_g * jnp.tanh(c)
        return (h, c), h

    x_tm = jnp.transpose(x, (1, 0, 2))  # (T, B, 1)
    init = (jnp.zeros((B, H), jnp.float32), jnp.zeros((B, H), jnp.float32))
    _, hs = lax.scan(cell, init, x_tm)
    hs = jnp.transpose(hs, (1, 0, 2))   # (B, T, H)
    return hs @ lin_w.T + lin_b         # (B, T, 1)


def init_params(key):
    """Deterministic init matching PyTorch shapes: U(-1/sqrt(H), 1/sqrt(H))."""
    H = HIDDEN
    k = 1.0 / jnp.sqrt(jnp.float32(H))
    ks = jax.random.split(key, 6)
    w_ih = jax.random.uniform(ks[0], (4 * H, 1), jnp.float32, -k, k)   # weight_ih_l0
    w_hh = jax.random.uniform(ks[1], (4 * H, H), jnp.float32, -k, k)   # weight_hh_l0
    b_ih = jax.random.uniform(ks[2], (4 * H,), jnp.float32, -k, k)     # bias_ih_l0
    b_hh = jax.random.uniform(ks[3], (4 * H,), jnp.float32, -k, k)     # bias_hh_l0
    lin_w = jax.random.uniform(ks[4], (1, H), jnp.float32, -k, k)      # linear.weight
    lin_b = jax.random.uniform(ks[5], (1,), jnp.float32, -k, k)        # linear.bias
    return (w_ih, w_hh, b_ih, b_hh, lin_w, lin_b)


if __name__ == "__main__":
    key = jax.random.PRNGKey(0)
    k_param, k_x1, k_x2 = jax.random.split(key, 3)
    params = init_params(k_param)

    # Primary small config matching the PyTorch module usage.
    B, T = 2, 8
    x = jax.random.normal(k_x1, (B, T, 1), jnp.float32)
    out = jax.block_until_ready(mc_classifier_forward(x, params))
    assert out.shape == (B, T, 1), out.shape
    ref = jax.block_until_ready(reference_forward(x, params))
    assert jnp.allclose(out, ref, atol=1e-5, rtol=1e-5), (
        "Pallas kernel mismatch vs JAX reference: "
        f"max abs err {jnp.max(jnp.abs(out - ref))}")

    # Second config exercising T-chunking, batch tiling, padding and the
    # persistent h/c carry across grid iterations.
    B2, T2 = 10, 24
    x2 = jax.random.normal(k_x2, (B2, T2, 1), jnp.float32)
    out2 = jax.block_until_ready(
        mc_classifier_forward(x2, params, t_tile=8, b_tile=8))
    assert out2.shape == (B2, T2, 1), out2.shape
    ref2 = jax.block_until_ready(reference_forward(x2, params))
    assert jnp.allclose(out2, ref2, atol=1e-5, rtol=1e-5), (
        "Pallas kernel mismatch vs JAX reference (chunked config): "
        f"max abs err {jnp.max(jnp.abs(out2 - ref2))}")

    print("KERNEL_OK")
</pallas_src>

<mosaic_0001>
module attributes {stable_mosaic.version = 11 : i64} {
  func.func @lstm_linear_kernel(%arg0: i32, %arg1: i32, %arg2: memref<1x1x8x8xf32, #tpu.memory_space<vmem>>, %arg3: memref<1x512xf32, #tpu.memory_space<vmem>>, %arg4: memref<1x512xf32, #tpu.memory_space<vmem>>, %arg5: memref<128x512xf32, #tpu.memory_space<vmem>>, %arg6: memref<1x1x128xf32, #tpu.memory_space<vmem>>, %arg7: memref<1xf32, #tpu.memory_space<smem>>, %arg8: memref<1x8x8xf32, #tpu.memory_space<vmem>>, %arg9: memref<8x128xf32, #tpu.memory_space<vmem>>, %arg10: memref<8x128xf32, #tpu.memory_space<vmem>>, %arg11: memref<8x8x128xf32, #tpu.memory_space<vmem>>) attributes {dimension_semantics = [#tpu.dimension_semantics<parallel>, #tpu.dimension_semantics<arbitrary>], iteration_bounds = array<i64: 1, 1>, scalar_prefetch = 0 : i64, scratch_operands = 3 : i64, tpu.core_type = #tpu.core_type<tc>, window_params = [{transform_indices = @transform_0, window_bounds = array<i64: 1, 1, 8, 8>}, {pipeline_mode = #tpu.pipeline_mode<synchronous>, transform_indices = @transform_1, window_bounds = array<i64: 1, 512>}, {pipeline_mode = #tpu.pipeline_mode<synchronous>, transform_indices = @transform_2, window_bounds = array<i64: 1, 512>}, {pipeline_mode = #tpu.pipeline_mode<synchronous>, transform_indices = @transform_3, window_bounds = array<i64: 128, 512>}, {pipeline_mode = #tpu.pipeline_mode<synchronous>, transform_indices = @transform_4, window_bounds = array<i64: 1, 1, 128>}, {transform_indices = @transform_5, window_bounds = array<i64: 1>}, {transform_indices = @transform_6, window_bounds = array<i64: 1, 8, 8>}]} {
    %c0_i32 = arith.constant 0 : i32
    %0 = arith.cmpi eq, %arg1, %c0_i32 : i32
    %1 = arith.extui %0 : i1 to i32
    %c0_i32_0 = arith.constant 0 : i32
    %2 = arith.cmpi ne, %1, %c0_i32_0 : i32
    scf.if %2 {
      %cst_85 = arith.constant 0.000000e+00 : f32
      %376 = vector.broadcast %cst_85 : f32 to vector<8x128xf32>
      %c0_86 = arith.constant 0 : index
      %c0_87 = arith.constant 0 : index
      %377 = vector.load %arg9[%c0_86, %c0_87] : memref<8x128xf32, #tpu.memory_space<vmem>>, vector<8x128xf32>
      tpu.vector_store %arg9[%c0_86, %c0_87], %376 {strides = array<i32>} : memref<8x128xf32, #tpu.memory_space<vmem>>, vector<8x128xf32>,
      %cst_88 = arith.constant 0.000000e+00 : f32
      %378 = vector.broadcast %cst_88 : f32 to vector<8x128xf32>
      %c0_89 = arith.constant 0 : index
      %c0_90 = arith.constant 0 : index
      %379 = vector.load %arg10[%c0_89, %c0_90] : memref<8x128xf32, #tpu.memory_space<vmem>>, vector<8x128xf32>
      tpu.vector_store %arg10[%c0_89, %c0_90], %378 {strides = array<i32>} : memref<8x128xf32, #tpu.memory_space<vmem>>, vector<8x128xf32>,
    } else {
    }
    %c0 = arith.constant 0 : index
    %c0_1 = arith.constant 0 : index
    %3 = vector.load %arg3[%c0, %c0_1] : memref<1x512xf32, #tpu.memory_space<vmem>>, vector<1x512xf32>
    %c0_2 = arith.constant 0 : index
    %c0_3 = arith.constant 0 : index
    %4 = vector.load %arg4[%c0_2, %c0_3] : memref<1x512xf32, #tpu.memory_space<vmem>>, vector<1x512xf32>
    %c0_4 = arith.constant 0 : index
    %c0_5 = arith.constant 0 : index
    %5 = vector.load %arg5[%c0_4, %c0_5] : memref<128x512xf32, #tpu.memory_space<vmem>>, vector<128x512xf32>
    %c0_6 = arith.constant 0 : index
    %c0_7 = arith.constant 0 : index
    %c0_8 = arith.constant 0 : index
    %c0_9 = arith.constant 0 : index
    %6 = vector.load %arg2[%c0_6, %c0_7, %c0_8, %c0_9] : memref<1x1x8x8xf32, #tpu.memory_space<vmem>>, vector<1x1x8x8xf32>
    %7 = vector.shape_cast %6 : vector<1x1x8x8xf32> to vector<8x8xf32>
    %8 = tpu.iota {dimensions = array<i32: 1>} : vector<1x8xi32>
    %c0_10 = arith.constant 0 : index
    %c0_11 = arith.constant 0 : index
    %9 = vector.load %arg9[%c0_10, %c0_11] : memref<8x128xf32, #tpu.memory_space<vmem>>, vector<8x128xf32>
    %c0_12 = arith.constant 0 : index
    %c0_13 = arith.constant 0 : index
    %10 = vector.load %arg10[%c0_12, %c0_13] : memref<8x128xf32, #tpu.memory_space<vmem>>, vector<8x128xf32>
    %c0_i32_14 = arith.constant 0 : i32
    %11 = vector.broadcast %c0_i32_14 : i32 to vector<1x8xi32>
    %12 = arith.cmpi eq, %8, %11 : vector<1x8xi32>
    %13 = arith.extui %12 : vector<1x8xi1> to vector<1x8xi32>
    %14 = arith.sitofp %13 : vector<1x8xi32> to vector<1x8xf32>
    %15 = vector.broadcast %14 : vector<1x8xf32> to vector<8x8xf32>
    %16 = arith.mulf %7, %15 : vector<8x8xf32>
    %cst = arith.constant dense<0.000000e+00> : vector<8xf32>
    %17 = vector.multi_reduction <add>, %16, %cst [1] : vector<8x8xf32> to vector<8xf32>
    %18 = vector.shape_cast %17 : vector<8xf32> to vector<8x1xf32>
    %19 = vector.broadcast %18 : vector<8x1xf32> to vector<8x512xf32>
    %20 = vector.broadcast %3 : vector<1x512xf32> to vector<8x512xf32>
    %21 = arith.mulf %19, %20 : vector<8x512xf32>
    %22 = vector.broadcast %4 : vector<1x512xf32> to vector<8x512xf32>
    %23 = arith.addf %21, %22 : vector<8x512xf32>
    %cst_15 = arith.constant dense<0.000000e+00> : vector<8x512xf32>
    %24 = tpu.matmul %9, %5, %cst_15 {dimension_numbers = #tpu.dot_dimension_numbers<[1], [0], [0], [1], [0, 0, 1, 1], [], []>} : vector<8x128xf32>, vector<128x512xf32>, vector<8x512xf32> -> vector<8x512xf32>
    %25 = arith.addf %24, %23 : vector<8x512xf32>
    %26 = vector.extract_strided_slice %25 {offsets = [0, 0], sizes = [8, 128], strides = [1, 1]} : vector<8x512xf32> to vector<8x128xf32>
    %27 = arith.negf %26 : vector<8x128xf32>
    %28 = math.exp %27 : vector<8x128xf32>
    %cst_16 = arith.constant 1.000000e+00 : f32
    %29 = vector.broadcast %cst_16 : f32 to vector<8x128xf32>
    %30 = arith.addf %29, %28 : vector<8x128xf32>
    %31 = arith.divf %29, %30 : vector<8x128xf32>
    %32 = vector.extract_strided_slice %25 {offsets = [0, 128], sizes = [8, 128], strides = [1, 1]} : vector<8x512xf32> to vector<8x128xf32>
    %33 = arith.negf %32 : vector<8x128xf32>
    %34 = math.exp %33 : vector<8x128xf32>
    %cst_17 = arith.constant 1.000000e+00 : f32
    %35 = vector.broadcast %cst_17 : f32 to vector<8x128xf32>
    %36 = arith.addf %35, %34 : vector<8x128xf32>
    %37 = arith.divf %35, %36 : vector<8x128xf32>
    %38 = vector.extract_strided_slice %25 {offsets = [0, 256], sizes = [8, 128], strides = [1, 1]} : vector<8x512xf32> to vector<8x128xf32>
    %39 = math.tanh %38 : vector<8x128xf32>
    %40 = vector.extract_strided_slice %25 {offsets = [0, 384], sizes = [8, 128], strides = [1, 1]} : vector<8x512xf32> to vector<8x128xf32>
    %41 = arith.negf %40 : vector<8x128xf32>
    %42 = math.exp %41 : vector<8x128xf32>
    %cst_18 = arith.constant 1.000000e+00 : f32
    %43 = vector.broadcast %cst_18 : f32 to vector<8x128xf32>
    %44 = arith.addf %43, %42 : vector<8x128xf32>
    %45 = arith.divf %43, %44 : vector<8x128xf32>
    %46 = arith.mulf %37, %10 : vector<8x128xf32>
    %47 = arith.mulf %31, %39 : vector<8x128xf32>
    %48 = arith.addf %46, %47 : vector<8x128xf32>
    %49 = math.tanh %48 : vector<8x128xf32>
    %50 = arith.mulf %45, %49 : vector<8x128xf32>
    %51 = arith.index_cast %c0_i32_14 : i32 to index
    %c0_19 = arith.constant 0 : index
    %c0_20 = arith.constant 0 : index
    %52 = vector.load %arg11[%51, %c0_19, %c0_20] : memref<8x8x128xf32, #tpu.memory_space<vmem>>, vector<1x8x128xf32>
    %53 = vector.shape_cast %52 : vector<1x8x128xf32> to vector<8x128xf32>
    %54 = vector.shape_cast %50 : vector<8x128xf32> to vector<1x8x128xf32>
    tpu.vector_store %arg11[%51, %c0_19, %c0_20], %54 {strides = array<i32>} : memref<8x8x128xf32, #tpu.memory_space<vmem>>, vector<1x8x128xf32>,
    %c1_i32 = arith.constant 1 : i32
    %55 = vector.broadcast %c1_i32 : i32 to vector<1x8xi32>
    %56 = arith.cmpi eq, %8, %55 : vector<1x8xi32>
    %57 = arith.extui %56 : vector<1x8xi1> to vector<1x8xi32>
    %58 = arith.sitofp %57 : vector<1x8xi32> to vector<1x8xf32>
    %59 = vector.broadcast %58 : vector<1x8xf32> to vector<8x8xf32>
    %60 = arith.mulf %7, %59 : vector<8x8xf32>
    %cst_21 = arith.constant dense<0.000000e+00> : vector<8xf32>
    %61 = vector.multi_reduction <add>, %60, %cst_21 [1] : vector<8x8xf32> to vector<8xf32>
    %62 = vector.shape_cast %61 : vector<8xf32> to vector<8x1xf32>
    %63 = vector.broadcast %62 : vector<8x1xf32> to vector<8x512xf32>
    %64 = vector.broadcast %3 : vector<1x512xf32> to vector<8x512xf32>
    %65 = arith.mulf %63, %64 : vector<8x512xf32>
    %66 = vector.broadcast %4 : vector<1x512xf32> to vector<8x512xf32>
    %67 = arith.addf %65, %66 : vector<8x512xf32>
    %cst_22 = arith.constant dense<0.000000e+00> : vector<8x512xf32>
    %68 = tpu.matmul %50, %5, %cst_22 {dimension_numbers = #tpu.dot_dimension_numbers<[1], [0], [0], [1], [0, 0, 1, 1], [], []>} : vector<8x128xf32>, vector<128x512xf32>, vector<8x512xf32> -> vector<8x512xf32>
    %69 = arith.addf %68, %67 : vector<8x512xf32>
    %70 = vector.extract_strided_slice %69 {offsets = [0, 0], sizes = [8, 128], strides = [1, 1]} : vector<8x512xf32> to vector<8x128xf32>
    %71 = arith.negf %70 : vector<8x128xf32>
    %72 = math.exp %71 : vector<8x128xf32>
    %cst_23 = arith.constant 1.000000e+00 : f32
    %73 = vector.broadcast %cst_23 : f32 to vector<8x128xf32>
    %74 = arith.addf %73, %72 : vector<8x128xf32>
    %75 = arith.divf %73, %74 : vector<8x128xf32>
    %76 = vector.extract_strided_slice %69 {offsets = [0, 128], sizes = [8, 128], strides = [1, 1]} : vector<8x512xf32> to vector<8x128xf32>
    %77 = arith.negf %76 : vector<8x128xf32>
    %78 = math.exp %77 : vector<8x128xf32>
    %cst_24 = arith.constant 1.000000e+00 : f32
    %79 = vector.broadcast %cst_24 : f32 to vector<8x128xf32>
    %80 = arith.addf %79, %78 : vector<8x128xf32>
    %81 = arith.divf %79, %80 : vector<8x128xf32>
    %82 = vector.extract_strided_slice %69 {offsets = [0, 256], sizes = [8, 128], strides = [1, 1]} : vector<8x512xf32> to vector<8x128xf32>
    %83 = math.tanh %82 : vector<8x128xf32>
    %84 = vector.extract_strided_slice %69 {offsets = [0, 384], sizes = [8, 128], strides = [1, 1]} : vector<8x512xf32> to vector<8x128xf32>
    %85 = arith.negf %84 : vector<8x128xf32>
    %86 = math.exp %85 : vector<8x128xf32>
    %cst_25 = arith.constant 1.000000e+00 : f32
    %87 = vector.broadcast %cst_25 : f32 to vector<8x128xf32>
    %88 = arith.addf %87, %86 : vector<8x128xf32>
    %89 = arith.divf %87, %88 : vector<8x128xf32>
    %90 = arith.mulf %81, %48 : vector<8x128xf32>
    %91 = arith.mulf %75, %83 : vector<8x128xf32>
    %92 = arith.addf %90, %91 : vector<8x128xf32>
    %93 = math.tanh %92 : vector<8x128xf32>
    %94 = arith.mulf %89, %93 : vector<8x128xf32>
    %95 = arith.index_cast %c1_i32 : i32 to index
    %c0_26 = arith.constant 0 : index
    %c0_27 = arith.constant 0 : index
    %96 = vector.load %arg11[%95, %c0_26, %c0_27] : memref<8x8x128xf32, #tpu.memory_space<vmem>>, vector<1x8x128xf32>
    %97 = vector.shape_cast %96 : vector<1x8x128xf32> to vector<8x128xf32>
    %98 = vector.shape_cast %94 : vector<8x128xf32> to vector<1x8x128xf32>
    tpu.vector_store %arg11[%95, %c0_26, %c0_27], %98 {strides = array<i32>} : memref<8x8x128xf32, #tpu.memory_space<vmem>>, vector<1x8x128xf32>,
    %c2_i32 = arith.constant 2 : i32
    %99 = vector.broadcast %c2_i32 : i32 to vector<1x8xi32>
    %100 = arith.cmpi eq, %8, %99 : vector<1x8xi32>
    %101 = arith.extui %100 : vector<1x8xi1> to vector<1x8xi32>
    %102 = arith.sitofp %101 : vector<1x8xi32> to vector<1x8xf32>
    %103 = vector.broadcast %102 : vector<1x8xf32> to vector<8x8xf32>
    %104 = arith.mulf %7, %103 : vector<8x8xf32>
    %cst_28 = arith.constant dense<0.000000e+00> : vector<8xf32>
    %105 = vector.multi_reduction <add>, %104, %cst_28 [1] : vector<8x8xf32> to vector<8xf32>
    %106 = vector.shape_cast %105 : vector<8xf32> to vector<8x1xf32>
    %107 = vector.broadcast %106 : vector<8x1xf32> to vector<8x512xf32>
    %108 = vector.broadcast %3 : vector<1x512xf32> to vector<8x512xf32>
    %109 = arith.mulf %107, %108 : vector<8x512xf32>
    %110 = vector.broadcast %4 : vector<1x512xf32> to vector<8x512xf32>
    %111 = arith.addf %109, %110 : vector<8x512xf32>
    %cst_29 = arith.constant dense<0.000000e+00> : vector<8x512xf32>
    %112 = tpu.matmul %94, %5, %cst_29 {dimension_numbers = #tpu.dot_dimension_numbers<[1], [0], [0], [1], [0, 0, 1, 1], [], []>} : vector<8x128xf32>, vector<128x512xf32>, vector<8x512xf32> -> vector<8x512xf32>
    %113 = arith.addf %112, %111 : vector<8x512xf32>
    %114 = vector.extract_strided_slice %113 {offsets = [0, 0], sizes = [8, 128], strides = [1, 1]} : vector<8x512xf32> to vector<8x128xf32>
    %115 = arith.negf %114 : vector<8x128xf32>
    %116 = math.exp %115 : vector<8x128xf32>
    %cst_30 = arith.constant 1.000000e+00 : f32
    %117 = vector.broadcast %cst_30 : f32 to vector<8x128xf32>
    %118 = arith.addf %117, %116 : vector<8x128xf32>
    %119 = arith.divf %117, %118 : vector<8x128xf32>
    %120 = vector.extract_strided_slice %113 {offsets = [0, 128], sizes = [8, 128], strides = [1, 1]} : vector<8x512xf32> to vector<8x128xf32>
    %121 = arith.negf %120 : vector<8x128xf32>
    %122 = math.exp %121 : vector<8x128xf32>
    %cst_31 = arith.constant 1.000000e+00 : f32
    %123 = vector.broadcast %cst_31 : f32 to vector<8x128xf32>
    %124 = arith.addf %123, %122 : vector<8x128xf32>
    %125 = arith.divf %123, %124 : vector<8x128xf32>
    %126 = vector.extract_strided_slice %113 {offsets = [0, 256], sizes = [8, 128], strides = [1, 1]} : vector<8x512xf32> to vector<8x128xf32>
    %127 = math.tanh %126 : vector<8x128xf32>
    %128 = vector.extract_strided_slice %113 {offsets = [0, 384], sizes = [8, 128], strides = [1, 1]} : vector<8x512xf32> to vector<8x128xf32>
    %129 = arith.negf %128 : vector<8x128xf32>
    %130 = math.exp %129 : vector<8x128xf32>
    %cst_32 = arith.constant 1.000000e+00 : f32
    %131 = vector.broadcast %cst_32 : f32 to vector<8x128xf32>
    %132 = arith.addf %131, %130 : vector<8x128xf32>
    %133 = arith.divf %131, %132 : vector<8x128xf32>
    %134 = arith.mulf %125, %92 : vector<8x128xf32>
    %135 = arith.mulf %119, %127 : vector<8x128xf32>
    %136 = arith.addf %134, %135 : vector<8x128xf32>
    %137 = math.tanh %136 : vector<8x128xf32>
    %138 = arith.mulf %133, %137 : vector<8x128xf32>
    %139 = arith.index_cast %c2_i32 : i32 to index
    %c0_33 = arith.constant 0 : index
    %c0_34 = arith.constant 0 : index
    %140 = vector.load %arg11[%139, %c0_33, %c0_34] : memref<8x8x128xf32, #tpu.memory_space<vmem>>, vector<1x8x128xf32>
    %141 = vector.shape_cast %140 : vector<1x8x128xf32> to vector<8x128xf32>
    %142 = vector.shape_cast %138 : vector<8x128xf32> to vector<1x8x128xf32>
    tpu.vector_store %arg11[%139, %c0_33, %c0_34], %142 {strides = array<i32>} : memref<8x8x128xf32, #tpu.memory_space<vmem>>, vector<1x8x128xf32>,
    %c3_i32 = arith.constant 3 : i32
    %143 = vector.broadcast %c3_i32 : i32 to vector<1x8xi32>
    %144 = arith.cmpi eq, %8, %143 : vector<1x8xi32>
    %145 = arith.extui %144 : vector<1x8xi1> to vector<1x8xi32>
    %146 = arith.sitofp %145 : vector<1x8xi32> to vector<1x8xf32>
    %147 = vector.broadcast %146 : vector<1x8xf32> to vector<8x8xf32>
    %148 = arith.mulf %7, %147 : vector<8x8xf32>
    %cst_35 = arith.constant dense<0.000000e+00> : vector<8xf32>
    %149 = vector.multi_reduction <add>, %148, %cst_35 [1] : vector<8x8xf32> to vector<8xf32>
    %150 = vector.shape_cast %149 : vector<8xf32> to vector<8x1xf32>
    %151 = vector.broadcast %150 : vector<8x1xf32> to vector<8x512xf32>
    %152 = vector.broadcast %3 : vector<1x512xf32> to vector<8x512xf32>
    %153 = arith.mulf %151, %152 : vector<8x512xf32>
    %154 = vector.broadcast %4 : vector<1x512xf32> to vector<8x512xf32>
    %155 = arith.addf %153, %154 : vector<8x512xf32>
    %cst_36 = arith.constant dense<0.000000e+00> : vector<8x512xf32>
    %156 = tpu.matmul %138, %5, %cst_36 {dimension_numbers = #tpu.dot_dimension_numbers<[1], [0], [0], [1], [0, 0, 1, 1], [], []>} : vector<8x128xf32>, vector<128x512xf32>, vector<8x512xf32> -> vector<8x512xf32>
    %157 = arith.addf %156, %155 : vector<8x512xf32>
    %158 = vector.extract_strided_slice %157 {offsets = [0, 0], sizes = [8, 128], strides = [1, 1]} : vector<8x512xf32> to vector<8x128xf32>
    %159 = arith.negf %158 : vector<8x128xf32>
    %160 = math.exp %159 : vector<8x128xf32>
    %cst_37 = arith.constant 1.000000e+00 : f32
    %161 = vector.broadcast %cst_37 : f32 to vector<8x128xf32>
    %162 = arith.addf %161, %160 : vector<8x128xf32>
    %163 = arith.divf %161, %162 : vector<8x128xf32>
    %164 = vector.extract_strided_slice %157 {offsets = [0, 128], sizes = [8, 128], strides = [1, 1]} : vector<8x512xf32> to vector<8x128xf32>
    %165 = arith.negf %164 : vector<8x128xf32>
    %166 = math.exp %165 : vector<8x128xf32>
    %cst_38 = arith.constant 1.000000e+00 : f32
    %167 = vector.broadcast %cst_38 : f32 to vector<8x128xf32>
    %168 = arith.addf %167, %166 : vector<8x128xf32>
    %169 = arith.divf %167, %168 : vector<8x128xf32>
    %170 = vector.extract_strided_slice %157 {offsets = [0, 256], sizes = [8, 128], strides = [1, 1]} : vector<8x512xf32> to vector<8x128xf32>
    %171 = math.tanh %170 : vector<8x128xf32>
    %172 = vector.extract_strided_slice %157 {offsets = [0, 384], sizes = [8, 128], strides = [1, 1]} : vector<8x512xf32> to vector<8x128xf32>
    %173 = arith.negf %172 : vector<8x128xf32>
    %174 = math.exp %173 : vector<8x128xf32>
    %cst_39 = arith.constant 1.000000e+00 : f32
    %175 = vector.broadcast %cst_39 : f32 to vector<8x128xf32>
    %176 = arith.addf %175, %174 : vector<8x128xf32>
    %177 = arith.divf %175, %176 : vector<8x128xf32>
    %178 = arith.mulf %169, %136 : vector<8x128xf32>
    %179 = arith.mulf %163, %171 : vector<8x128xf32>
    %180 = arith.addf %178, %179 : vector<8x128xf32>
    %181 = math.tanh %180 : vector<8x128xf32>
    %182 = arith.mulf %177, %181 : vector<8x128xf32>
    %183 = arith.index_cast %c3_i32 : i32 to index
    %c0_40 = arith.constant 0 : index
    %c0_41 = arith.constant 0 : index
    %184 = vector.load %arg11[%183, %c0_40, %c0_41] : memref<8x8x128xf32, #tpu.memory_space<vmem>>, vector<1x8x128xf32>
    %185 = vector.shape_cast %184 : vector<1x8x128xf32> to vector<8x128xf32>
    %186 = vector.shape_cast %182 : vector<8x128xf32> to vector<1x8x128xf32>
    tpu.vector_store %arg11[%183, %c0_40, %c0_41], %186 {strides = array<i32>} : memref<8x8x128xf32, #tpu.memory_space<vmem>>, vector<1x8x128xf32>,
    %c4_i32 = arith.constant 4 : i32
    %187 = vector.broadcast %c4_i32 : i32 to vector<1x8xi32>
    %188 = arith.cmpi eq, %8, %187 : vector<1x8xi32>
    %189 = arith.extui %188 : vector<1x8xi1> to vector<1x8xi32>
    %190 = arith.sitofp %189 : vector<1x8xi32> to vector<1x8xf32>
    %191 = vector.broadcast %190 : vector<1x8xf32> to vector<8x8xf32>
    %192 = arith.mulf %7, %191 : vector<8x8xf32>
    %cst_42 = arith.constant dense<0.000000e+00> : vector<8xf32>
    %193 = vector.multi_reduction <add>, %192, %cst_42 [1] : vector<8x8xf32> to vector<8xf32>
    %194 = vector.shape_cast %193 : vector<8xf32> to vector<8x1xf32>
    %195 = vector.broadcast %194 : vector<8x1xf32> to vector<8x512xf32>
    %196 = vector.broadcast %3 : vector<1x512xf32> to vector<8x512xf32>
    %197 = arith.mulf %195, %196 : vector<8x512xf32>
    %198 = vector.broadcast %4 : vector<1x512xf32> to vector<8x512xf32>
    %199 = arith.addf %197, %198 : vector<8x512xf32>
    %cst_43 = arith.constant dense<0.000000e+00> : vector<8x512xf32>
    %200 = tpu.matmul %182, %5, %cst_43 {dimension_numbers = #tpu.dot_dimension_numbers<[1], [0], [0], [1], [0, 0, 1, 1], [], []>} : vector<8x128xf32>, vector<128x512xf32>, vector<8x512xf32> -> vector<8x512xf32>
    %201 = arith.addf %200, %199 : vector<8x512xf32>
    %202 = vector.extract_strided_slice %201 {offsets = [0, 0], sizes = [8, 128], strides = [1, 1]} : vector<8x512xf32> to vector<8x128xf32>
    %203 = arith.negf %202 : vector<8x128xf32>
    %204 = math.exp %203 : vector<8x128xf32>
    %cst_44 = arith.constant 1.000000e+00 : f32
    %205 = vector.broadcast %cst_44 : f32 to vector<8x128xf32>
    %206 = arith.addf %205, %204 : vector<8x128xf32>
    %207 = arith.divf %205, %206 : vector<8x128xf32>
    %208 = vector.extract_strided_slice %201 {offsets = [0, 128], sizes = [8, 128], strides = [1, 1]} : vector<8x512xf32> to vector<8x128xf32>
    %209 = arith.negf %208 : vector<8x128xf32>
    %210 = math.exp %209 : vector<8x128xf32>
    %cst_45 = arith.constant 1.000000e+00 : f32
    %211 = vector.broadcast %cst_45 : f32 to vector<8x128xf32>
    %212 = arith.addf %211, %210 : vector<8x128xf32>
    %213 = arith.divf %211, %212 : vector<8x128xf32>
    %214 = vector.extract_strided_slice %201 {offsets = [0, 256], sizes = [8, 128], strides = [1, 1]} : vector<8x512xf32> to vector<8x128xf32>
    %215 = math.tanh %214 : vector<8x128xf32>
    %216 = vector.extract_strided_slice %201 {offsets = [0, 384], sizes = [8, 128], strides = [1, 1]} : vector<8x512xf32> to vector<8x128xf32>
    %217 = arith.negf %216 : vector<8x128xf32>
    %218 = math.exp %217 : vector<8x128xf32>
    %cst_46 = arith.constant 1.000000e+00 : f32
    %219 = vector.broadcast %cst_46 : f32 to vector<8x128xf32>
    %220 = arith.addf %219, %218 : vector<8x128xf32>
    %221 = arith.divf %219, %220 : vector<8x128xf32>
    %222 = arith.mulf %213, %180 : vector<8x128xf32>
    %223 = arith.mulf %207, %215 : vector<8x128xf32>
    %224 = arith.addf %222, %223 : vector<8x128xf32>
    %225 = math.tanh %224 : vector<8x128xf32>
    %226 = arith.mulf %221, %225 : vector<8x128xf32>
    %227 = arith.index_cast %c4_i32 : i32 to index
    %c0_47 = arith.constant 0 : index
    %c0_48 = arith.constant 0 : index
    %228 = vector.load %arg11[%227, %c0_47, %c0_48] : memref<8x8x128xf32, #tpu.memory_space<vmem>>, vector<1x8x128xf32>
    %229 = vector.shape_cast %228 : vector<1x8x128xf32> to vector<8x128xf32>
    %230 = vector.shape_cast %226 : vector<8x128xf32> to vector<1x8x128xf32>
    tpu.vector_store %arg11[%227, %c0_47, %c0_48], %230 {strides = array<i32>} : memref<8x8x128xf32, #tpu.memory_space<vmem>>, vector<1x8x128xf32>,
    %c5_i32 = arith.constant 5 : i32
    %231 = vector.broadcast %c5_i32 : i32 to vector<1x8xi32>
    %232 = arith.cmpi eq, %8, %231 : vector<1x8xi32>
    %233 = arith.extui %232 : vector<1x8xi1> to vector<1x8xi32>
    %234 = arith.sitofp %233 : vector<1x8xi32> to vector<1x8xf32>
    %235 = vector.broadcast %234 : vector<1x8xf32> to vector<8x8xf32>
    %236 = arith.mulf %7, %235 : vector<8x8xf32>
    %cst_49 = arith.constant dense<0.000000e+00> : vector<8xf32>
    %237 = vector.multi_reduction <add>, %236, %cst_49 [1] : vector<8x8xf32> to vector<8xf32>
    %238 = vector.shape_cast %237 : vector<8xf32> to vector<8x1xf32>
    %239 = vector.broadcast %238 : vector<8x1xf32> to vector<8x512xf32>
    %240 = vector.broadcast %3 : vector<1x512xf32> to vector<8x512xf32>
    %241 = arith.mulf %239, %240 : vector<8x512xf32>
    %242 = vector.broadcast %4 : vector<1x512xf32> to vector<8x512xf32>
    %243 = arith.addf %241, %242 : vector<8x512xf32>
    %cst_50 = arith.constant dense<0.000000e+00> : vector<8x512xf32>
    %244 = tpu.matmul %226, %5, %cst_50 {dimension_numbers = #tpu.dot_dimension_numbers<[1], [0], [0], [1], [0, 0, 1, 1], [], []>} : vector<8x128xf32>, vector<128x512xf32>, vector<8x512xf32> -> vector<8x512xf32>
    %245 = arith.addf %244, %243 : vector<8x512xf32>
    %246 = vector.extract_strided_slice %245 {offsets = [0, 0], sizes = [8, 128], strides = [1, 1]} : vector<8x512xf32> to vector<8x128xf32>
    %247 = arith.negf %246 : vector<8x128xf32>
    %248 = math.exp %247 : vector<8x128xf32>
    %cst_51 = arith.constant 1.000000e+00 : f32
    %249 = vector.broadcast %cst_51 : f32 to vector<8x128xf32>
    %250 = arith.addf %249, %248 : vector<8x128xf32>
    %251 = arith.divf %249, %250 : vector<8x128xf32>
    %252 = vector.extract_strided_slice %245 {offsets = [0, 128], sizes = [8, 128], strides = [1, 1]} : vector<8x512xf32> to vector<8x128xf32>
    %253 = arith.negf %252 : vector<8x128xf32>
    %254 = math.exp %253 : vector<8x128xf32>
    %cst_52 = arith.constant 1.000000e+00 : f32
    %255 = vector.broadcast %cst_52 : f32 to vector<8x128xf32>
    %256 = arith.addf %255, %254 : vector<8x128xf32>
    %257 = arith.divf %255, %256 : vector<8x128xf32>
    %258 = vector.extract_strided_slice %245 {offsets = [0, 256], sizes = [8, 128], strides = [1, 1]} : vector<8x512xf32> to vector<8x128xf32>
    %259 = math.tanh %258 : vector<8x128xf32>
    %260 = vector.extract_strided_slice %245 {offsets = [0, 384], sizes = [8, 128], strides = [1, 1]} : vector<8x512xf32> to vector<8x128xf32>
    %261 = arith.negf %260 : vector<8x128xf32>
    %262 = math.exp %261 : vector<8x128xf32>
    %cst_53 = arith.constant 1.000000e+00 : f32
    %263 = vector.broadcast %cst_53 : f32 to vector<8x128xf32>
    %264 = arith.addf %263, %262 : vector<8x128xf32>
    %265 = arith.divf %263, %264 : vector<8x128xf32>
    %266 = arith.mulf %257, %224 : vector<8x128xf32>
    %267 = arith.mulf %251, %259 : vector<8x128xf32>
    %268 = arith.addf %266, %267 : vector<8x128xf32>
    %269 = math.tanh %268 : vector<8x128xf32>
    %270 = arith.mulf %265, %269 : vector<8x128xf32>
    %271 = arith.index_cast %c5_i32 : i32 to index
    %c0_54 = arith.constant 0 : index
    %c0_55 = arith.constant 0 : index
    %272 = vector.load %arg11[%271, %c0_54, %c0_55] : memref<8x8x128xf32, #tpu.memory_space<vmem>>, vector<1x8x128xf32>
    %273 = vector.shape_cast %272 : vector<1x8x128xf32> to vector<8x128xf32>
    %274 = vector.shape_cast %270 : vector<8x128xf32> to vector<1x8x128xf32>
    tpu.vector_store %arg11[%271, %c0_54, %c0_55], %274 {strides = array<i32>} : memref<8x8x128xf32, #tpu.memory_space<vmem>>, vector<1x8x128xf32>,
    %c6_i32 = arith.constant 6 : i32
    %275 = vector.broadcast %c6_i32 : i32 to vector<1x8xi32>
    %276 = arith.cmpi eq, %8, %275 : vector<1x8xi32>
    %277 = arith.extui %276 : vector<1x8xi1> to vector<1x8xi32>
    %278 = arith.sitofp %277 : vector<1x8xi32> to vector<1x8xf32>
    %279 = vector.broadcast %278 : vector<1x8xf32> to vector<8x8xf32>
    %280 = arith.mulf %7, %279 : vector<8x8xf32>
    %cst_56 = arith.constant dense<0.000000e+00> : vector<8xf32>
    %281 = vector.multi_reduction <add>, %280, %cst_56 [1] : vector<8x8xf32> to vector<8xf32>
    %282 = vector.shape_cast %281 : vector<8xf32> to vector<8x1xf32>
    %283 = vector.broadcast %282 : vector<8x1xf32> to vector<8x512xf32>
    %284 = vector.broadcast %3 : vector<1x512xf32> to vector<8x512xf32>
    %285 = arith.mulf %283, %284 : vector<8x512xf32>
    %286 = vector.broadcast %4 : vector<1x512xf32> to vector<8x512xf32>
    %287 = arith.addf %285, %286 : vector<8x512xf32>
    %cst_57 = arith.constant dense<0.000000e+00> : vector<8x512xf32>
    %288 = tpu.matmul %270, %5, %cst_57 {dimension_numbers = #tpu.dot_dimension_numbers<[1], [0], [0], [1], [0, 0, 1, 1], [], []>} : vector<8x128xf32>, vector<128x512xf32>, vector<8x512xf32> -> vector<8x512xf32>
    %289 = arith.addf %288, %287 : vector<8x512xf32>
    %290 = vector.extract_strided_slice %289 {offsets = [0, 0], sizes = [8, 128], strides = [1, 1]} : vector<8x512xf32> to vector<8x128xf32>
    %291 = arith.negf %290 : vector<8x128xf32>
    %292 = math.exp %291 : vector<8x128xf32>
    %cst_58 = arith.constant 1.000000e+00 : f32
    %293 = vector.broadcast %cst_58 : f32 to vector<8x128xf32>
    %294 = arith.addf %293, %292 : vector<8x128xf32>
    %295 = arith.divf %293, %294 : vector<8x128xf32>
    %296 = vector.extract_strided_slice %289 {offsets = [0, 128], sizes = [8, 128], strides = [1, 1]} : vector<8x512xf32> to vector<8x128xf32>
    %297 = arith.negf %296 : vector<8x128xf32>
    %298 = math.exp %297 : vector<8x128xf32>
    %cst_59 = arith.constant 1.000000e+00 : f32
    %299 = vector.broadcast %cst_59 : f32 to vector<8x128xf32>
    %300 = arith.addf %299, %298 : vector<8x128xf32>
    %301 = arith.divf %299, %300 : vector<8x128xf32>
    %302 = vector.extract_strided_slice %289 {offsets = [0, 256], sizes = [8, 128], strides = [1, 1]} : vector<8x512xf32> to vector<8x128xf32>
    %303 = math.tanh %302 : vector<8x128xf32>
    %304 = vector.extract_strided_slice %289 {offsets = [0, 384], sizes = [8, 128], strides = [1, 1]} : vector<8x512xf32> to vector<8x128xf32>
    %305 = arith.negf %304 : vector<8x128xf32>
    %306 = math.exp %305 : vector<8x128xf32>
    %cst_60 = arith.constant 1.000000e+00 : f32
    %307 = vector.broadcast %cst_60 : f32 to vector<8x128xf32>
    %308 = arith.addf %307, %306 : vector<8x128xf32>
    %309 = arith.divf %307, %308 : vector<8x128xf32>
    %310 = arith.mulf %301, %268 : vector<8x128xf32>
    %311 = arith.mulf %295, %303 : vector<8x128xf32>
    %312 = arith.addf %310, %311 : vector<8x128xf32>
    %313 = math.tanh %312 : vector<8x128xf32>
    %314 = arith.mulf %309, %313 : vector<8x128xf32>
    %315 = arith.index_cast %c6_i32 : i32 to index
    %c0_61 = arith.constant 0 : index
    %c0_62 = arith.constant 0 : index
    %316 = vector.load %arg11[%315, %c0_61, %c0_62] : memref<8x8x128xf32, #tpu.memory_space<vmem>>, vector<1x8x128xf32>
    %317 = vector.shape_cast %316 : vector<1x8x128xf32> to vector<8x128xf32>
    %318 = vector.shape_cast %314 : vector<8x128xf32> to vector<1x8x128xf32>
    tpu.vector_store %arg11[%315, %c0_61, %c0_62], %318 {strides = array<i32>} : memref<8x8x128xf32, #tpu.memory_space<vmem>>, vector<1x8x128xf32>,
    %c7_i32 = arith.constant 7 : i32
    %319 = vector.broadcast %c7_i32 : i32 to vector<1x8xi32>
    %320 = arith.cmpi eq, %8, %319 : vector<1x8xi32>
    %321 = arith.extui %320 : vector<1x8xi1> to vector<1x8xi32>
    %322 = arith.sitofp %321 : vector<1x8xi32> to vector<1x8xf32>
    %323 = vector.broadcast %322 : vector<1x8xf32> to vector<8x8xf32>
    %324 = arith.mulf %7, %323 : vector<8x8xf32>
    %cst_63 = arith.constant dense<0.000000e+00> : vector<8xf32>
    %325 = vector.multi_reduction <add>, %324, %cst_63 [1] : vector<8x8xf32> to vector<8xf32>
    %326 = vector.shape_cast %325 : vector<8xf32> to vector<8x1xf32>
    %327 = vector.broadcast %326 : vector<8x1xf32> to vector<8x512xf32>
    %328 = vector.broadcast %3 : vector<1x512xf32> to vector<8x512xf32>
    %329 = arith.mulf %327, %328 : vector<8x512xf32>
    %330 = vector.broadcast %4 : vector<1x512xf32> to vector<8x512xf32>
    %331 = arith.addf %329, %330 : vector<8x512xf32>
    %cst_64 = arith.constant dense<0.000000e+00> : vector<8x512xf32>
    %332 = tpu.matmul %314, %5, %cst_64 {dimension_numbers = #tpu.dot_dimension_numbers<[1], [0], [0], [1], [0, 0, 1, 1], [], []>} : vector<8x128xf32>, vector<128x512xf32>, vector<8x512xf32> -> vector<8x512xf32>
    %333 = arith.addf %332, %331 : vector<8x512xf32>
    %334 = vector.extract_strided_slice %333 {offsets = [0, 0], sizes = [8, 128], strides = [1, 1]} : vector<8x512xf32> to vector<8x128xf32>
    %335 = arith.negf %334 : vector<8x128xf32>
    %336 = math.exp %335 : vector<8x128xf32>
    %cst_65 = arith.constant 1.000000e+00 : f32
    %337 = vector.broadcast %cst_65 : f32 to vector<8x128xf32>
    %338 = arith.addf %337, %336 : vector<8x128xf32>
    %339 = arith.divf %337, %338 : vector<8x128xf32>
    %340 = vector.extract_strided_slice %333 {offsets = [0, 128], sizes = [8, 128], strides = [1, 1]} : vector<8x512xf32> to vector<8x128xf32>
    %341 = arith.negf %340 : vector<8x128xf32>
    %342 = math.exp %341 : vector<8x128xf32>
    %cst_66 = arith.constant 1.000000e+00 : f32
    %343 = vector.broadcast %cst_66 : f32 to vector<8x128xf32>
    %344 = arith.addf %343, %342 : vector<8x128xf32>
    %345 = arith.divf %343, %344 : vector<8x128xf32>
    %346 = vector.extract_strided_slice %333 {offsets = [0, 256], sizes = [8, 128], strides = [1, 1]} : vector<8x512xf32> to vector<8x128xf32>
    %347 = math.tanh %346 : vector<8x128xf32>
    %348 = vector.extract_strided_slice %333 {offsets = [0, 384], sizes = [8, 128], strides = [1, 1]} : vector<8x512xf32> to vector<8x128xf32>
    %349 = arith.negf %348 : vector<8x128xf32>
    %350 = math.exp %349 : vector<8x128xf32>
    %cst_67 = arith.constant 1.000000e+00 : f32
    %351 = vector.broadcast %cst_67 : f32 to vector<8x128xf32>
    %352 = arith.addf %351, %350 : vector<8x128xf32>
    %353 = arith.divf %351, %352 : vector<8x128xf32>
    %354 = arith.mulf %345, %312 : vector<8x128xf32>
    %355 = arith.mulf %339, %347 : vector<8x128xf32>
    %356 = arith.addf %354, %355 : vector<8x128xf32>
    %357 = math.tanh %356 : vector<8x128xf32>
    %358 = arith.mulf %353, %357 : vector<8x128xf32>
    %359 = arith.index_cast %c7_i32 : i32 to index
    %c0_68 = arith.constant 0 : index
    %c0_69 = arith.constant 0 : index
    %360 = vector.load %arg11[%359, %c0_68, %c0_69] : memref<8x8x128xf32, #tpu.memory_space<vmem>>, vector<1x8x128xf32>
    %361 = vector.shape_cast %360 : vector<1x8x128xf32> to vector<8x128xf32>
    %362 = vector.shape_cast %358 : vector<8x128xf32> to vector<1x8x128xf32>
    tpu.vector_store %arg11[%359, %c0_68, %c0_69], %362 {strides = array<i32>} : memref<8x8x128xf32, #tpu.memory_space<vmem>>, vector<1x8x128xf32>,
    %c8_i32 = arith.constant 8 : i32
    %c0_70 = arith.constant 0 : index
    %c0_71 = arith.constant 0 : index
    %363 = vector.load %arg9[%c0_70, %c0_71] : memref<8x128xf32, #tpu.memory_space<vmem>>, vector<8x128xf32>
    tpu.vector_store %arg9[%c0_70, %c0_71], %358 {strides = array<i32>} : memref<8x128xf32, #tpu.memory_space<vmem>>, vector<8x128xf32>,
    %c0_72 = arith.constant 0 : index
    %c0_73 = arith.constant 0 : index
    %364 = vector.load %arg10[%c0_72, %c0_73] : memref<8x128xf32, #tpu.memory_space<vmem>>, vector<8x128xf32>
    tpu.vector_store %arg10[%c0_72, %c0_73], %356 {strides = array<i32>} : memref<8x128xf32, #tpu.memory_space<vmem>>, vector<8x128xf32>,
    %c0_74 = arith.constant 0 : index
    %c0_75 = arith.constant 0 : index
    %c0_76 = arith.constant 0 : index
    %365 = vector.load %arg11[%c0_74, %c0_75, %c0_76] : memref<8x8x128xf32, #tpu.memory_space<vmem>>, vector<8x8x128xf32>
    %c0_77 = arith.constant 0 : index
    %c0_78 = arith.constant 0 : index
    %c0_79 = arith.constant 0 : index
    %366 = vector.load %arg6[%c0_77, %c0_78, %c0_79] : memref<1x1x128xf32, #tpu.memory_space<vmem>>, vector<1x1x128xf32>
    %367 = vector.broadcast %366 : vector<1x1x128xf32> to vector<8x8x128xf32>
    %368 = arith.mulf %365, %367 : vector<8x8x128xf32>
    %cst_80 = arith.constant dense<0.000000e+00> : vector<8x8xf32>
    %369 = vector.multi_reduction <add>, %368, %cst_80 [2] : vector<8x8x128xf32> to vector<8x8xf32>
    %c0_81 = arith.constant 0 : index
    %370 = memref.load %arg7[%c0_81] : memref<1xf32, #tpu.memory_space<smem>>
    %371 = vector.broadcast %370 : f32 to vector<8x8xf32>
    %372 = arith.addf %369, %371 : vector<8x8xf32>
    %c0_82 = arith.constant 0 : index
    %c0_83 = arith.constant 0 : index
    %c0_84 = arith.constant 0 : index
    %373 = vector.load %arg8[%c0_82, %c0_83, %c0_84] : memref<1x8x8xf32, #tpu.memory_space<vmem>>, vector<1x8x8xf32>
    %374 = vector.shape_cast %373 : vector<1x8x8xf32> to vector<8x8xf32>
    %375 = vector.shape_cast %372 : vector<8x8xf32> to vector<1x8x8xf32>
    tpu.vector_store %arg8[%c0_82, %c0_83, %c0_84], %375 {strides = array<i32>} : memref<1x8x8xf32, #tpu.memory_space<vmem>>, vector<1x8x8xf32>,
    return
  }
  func.func @transform_0(%arg0: i32, %arg1: i32) -> (i32, i32, i32, i32) {
    %c0_i32 = arith.constant 0 : i32
    %c0_i32_0 = arith.constant 0 : i32
    %c0_i32_1 = arith.constant 0 : i32
    return %arg0, %arg1, %c0_i32, %c0_i32_0 : i32, i32, i32, i32
  }
  func.func @transform_1(%arg0: i32, %arg1: i32) -> (i32, i32) {
    %c0_i32 = arith.constant 0 : i32
    %c0_i32_0 = arith.constant 0 : i32
    %c0_i32_1 = arith.constant 0 : i32
    return %c0_i32, %c0_i32_0 : i32, i32
  }
  func.func @transform_2(%arg0: i32, %arg1: i32) -> (i32, i32) {
    %c0_i32 = arith.constant 0 : i32
    %c0_i32_0 = arith.constant 0 : i32
    %c0_i32_1 = arith.constant 0 : i32
    return %c0_i32, %c0_i32_0 : i32, i32
  }
  func.func @transform_3(%arg0: i32, %arg1: i32) -> (i32, i32) {
    %c0_i32 = arith.constant 0 : i32
    %c0_i32_0 = arith.constant 0 : i32
    %c0_i32_1 = arith.constant 0 : i32
    return %c0_i32, %c0_i32_0 : i32, i32
  }
  func.func @transform_4(%arg0: i32, %arg1: i32) -> (i32, i32, i32) {
    %c0_i32 = arith.constant 0 : i32
    %c0_i32_0 = arith.constant 0 : i32
    %c0_i32_1 = arith.constant 0 : i32
    %c0_i32_2 = arith.constant 0 : i32
    return %c0_i32, %c0_i32_0, %c0_i32_1 : i32, i32, i32
  }
  func.func @transform_5(%arg0: i32, %arg1: i32) -> i32 {
    %c0_i32 = arith.constant 0 : i32
    %c0_i32_0 = arith.constant 0 : i32
    return %c0_i32 : i32
  }
  func.func @transform_6(%arg0: i32, %arg1: i32) -> (i32, i32, i32) {
    %c0_i32 = arith.constant 0 : i32
    %c0_i32_0 = arith.constant 0 : i32
    return %arg0, %arg1, %c0_i32 : i32, i32, i32
  }
}

</mosaic_0001>

<bundles_post_ra>
// kernel: mc_classifier_forward.1
= control target key start
LH: loop header
LB: loop body
LE: loop exit
PB: predicated region body
PF: predicated region fallthrough
CT: control target
= control target key end

     0   :  { %v3149_v3 = vmov 0.0   ;;  %v97_v39 = vlaneseq  ;;  %vm105_vm1 = vcmask 64512   ;;  %vm1698_vm9 = vcmask 1041409   ;;  %s3142_s3 = inlined_call_operand.vmem [shape: f32[128,512], index: 3, kind: input, shape index: {}]   ;;  %s3143_s0 = inlined_call_operand.vmem [shape: f32[1,1,8,8], index: 0, kind: input, shape index: {}]   ;;  %s3144_s1 = inlined_call_operand.vmem [shape: f32[1,512], index: 1, kind: input, shape index: {}]   ;;  %s3145_s2 = inlined_call_operand.vmem [shape: f32[1,512], index: 2, kind: input, shape index: {}]   ;;  %s3146_s4 = inlined_call_operand.vmem [shape: f32[1,1,128], index: 4, kind: input, shape index: {}]   ;;  %s3147_s5 = inlined_call_operand.<no memory space> [shape: f32[1], index: 5, kind: input, shape index: {}]   ;;  %s3148_s6 = inlined_call_operand.vmem [shape: f32[1,8,8], index: 6, kind: output, shape index: {}]  }
   0x1   :  { %v33_v0 = vld [vmem:[%s3142_s3 + $0x8] sm:$0xff]  ;;  %v35_v2 = vld [vmem:[%s3142_s3 + $0x18] sm:$0xff]  ;;  %223 = vmatprep.mubr.f32.mxu0 %v3149_v3  ;;  %294 = vmatprep.mubr.f32.mxu1 %v3149_v3  ;;  %v32_v6 = vld [vmem:[%s3142_s3] sm:$0xff]  ;;  %vm1700_vm10 = vcmask 1042434   ;;  %vm1702_vm11 = vcmask 1043459   ;;  %vm1704_vm12 = vcmask 1044484  }
   0x2   :  { %v37_v1 = vld [vmem:[%s3142_s3 + $0x28] sm:$0xff]  ;;  %v39_v5 = vld [vmem:[%s3142_s3 + $0x38] sm:$0xff]  ;;  %v36_v7 = vld [vmem:[%s3142_s3 + $0x20] sm:$0xff]  ;;  %v2581_v53 = vand.u32 127, %v97_v39  ;;  %vm1706_vm13 = vcmask 1045509   ;;  %vm1708_vm14 = vcmask 1046534  }
   0x3   :  { %v2440_v4 = vpack.c.bf16 %v37_v1, %v33_v0  ;;  %v2451_v8 = vpack.c.bf16 %v39_v5, %v35_v2  ;;  %v2453_v9 = vpack.c.bf16 %v36_v7, %v32_v6  ;;  %v34_v10 = vld [vmem:[%s3142_s3 + $0x10] sm:$0xff]  ;;  %v41_v12 = vld [vmem:[%s3142_s3 + $0x48] sm:$0xff]  ;;  %v43_v15 = vld [vmem:[%s3142_s3 + $0x58] sm:$0xff]  ;;  %vm1710_vm15 = vcmask 1047559  }
   0x4   :  { %v38_v11 = vld [vmem:[%s3142_s3 + $0x30] sm:$0xff]  ;;  %v45_v14 = vld [vmem:[%s3142_s3 + $0x68] sm:$0xff]  ;;  %v47_v16 = vld [vmem:[%s3142_s3 + $0x78] sm:$0xff]  ;;  %3153 = vst [vmem:[#allocation6_spill] sm:$0xff] %v2581_v53  ;;  %vm101_vm0 = vcmp.eq.s32.totalorder %v2581_v53, 0  ;;  %vm326_vm2 = vcmp.eq.s32.totalorder %v2581_v53, 1 }
   0x5   :  { %1752 = vmatprep.subr.bf16.mxu0 %v2440_v4  ;;  %v2465_v13 = vpack.c.bf16 %v38_v11, %v34_v10  ;;  %1784 = vmatprep.subr.bf16.mxu1 %v2451_v8  ;;  %v2478_v17 = vpack.c.bf16 %v45_v14, %v41_v12  ;;  %v2480_v18 = vpack.c.bf16 %v47_v16, %v43_v15  ;;  %v40_v19 = vld [vmem:[%s3142_s3 + $0x40] sm:$0xff]  ;;  %v42_v21 = vld [vmem:[%s3142_s3 + $0x50] sm:$0xff]  ;;  %v49_v24 = vld [vmem:[%s3142_s3 + $0x88] sm:$0xff]  ;;  %vm875_vm3 = vcmp.eq.s32.totalorder %v2581_v53, 4 }
   0x6   :  { %1754 = vmatpush1.bf16.msra.mxu0 %v2453_v9  ;;  %v44_v20 = vld [vmem:[%s3142_s3 + $0x60] sm:$0xff]  ;;  %v46_v23 = vld [vmem:[%s3142_s3 + $0x70] sm:$0xff]  ;;  %v53_v25 = vld [vmem:[%s3142_s3 + $0xa8] sm:$0xff]  ;;  %vm1241_vm4 = vcmp.eq.s32.totalorder %v2581_v53, 6  ;;  %vm509_vm5 = vcmp.eq.s32.totalorder %v2581_v53, 2  ;;  %vm692_vm6 = vcmp.eq.s32.totalorder %v2581_v53, 3 }
   0x7   :  { %1786 = vmatpush1.bf16.msra.mxu1 %v2465_v13  ;;  %v2492_v22 = vpack.c.bf16 %v44_v20, %v40_v19  ;;  %1756 = vmatprep.subr.bf16.mxu0 %v2478_v17  ;;  %v2505_v26 = vpack.c.bf16 %v46_v23, %v42_v21  ;;  %v2507_v27 = vpack.c.bf16 %v53_v25, %v49_v24  ;;  %v51_v28 = vld [vmem:[%s3142_s3 + $0x98] sm:$0xff]  ;;  %v48_v30 = vld [vmem:[%s3142_s3 + $0x80] sm:$0xff]  ;;  %v50_v33 = vld [vmem:[%s3142_s3 + $0x90] sm:$0xff]  ;;  %v1718_v20 = vsel %vm101_vm0, 1.0, %v3149_v3 }
   0x8   :  { %1788 = vmatprep.subr.bf16.mxu1 %v2480_v18  ;;  %v55_v29 = vld [vmem:[%s3142_s3 + $0xb8] sm:$0xff]  ;;  %v52_v32 = vld [vmem:[%s3142_s3 + $0xa0] sm:$0xff]  ;;  %v54_v34 = vld [vmem:[%s3142_s3 + $0xb0] sm:$0xff]  ;;  %vm1058_vm7 = vcmp.eq.s32.totalorder %v2581_v53, 5  ;;  %vm1424_vm8 = vcmp.eq.s32.totalorder %v2581_v53, 7 }
   0x9   :  { %v2518_v31 = vpack.c.bf16 %v55_v29, %v51_v28  ;;  %v2530_v35 = vpack.c.bf16 %v52_v32, %v48_v30  ;;  %v57_v36 = vld [vmem:[%s3142_s3 + $0xc8] sm:$0xff]  ;;  %v59_v38 = vld [vmem:[%s3142_s3 + $0xd8] sm:$0xff]  ;;  %v2543_v40 = vpack.c.bf16 %v54_v34, %v50_v33  ;;  %v56_v43 = vld [vmem:[%s3142_s3 + $0xc0] sm:$0xff] }
   0xa   :  { %1758 = vmatpush1.bf16.msra.mxu0 %v2492_v22  ;;  %v61_v37 = vld [vmem:[%s3142_s3 + $0xe8] sm:$0xff]  ;;  %v63_v42 = vld [vmem:[%s3142_s3 + $0xf8] sm:$0xff]  ;;  %v60_v44 = vld [vmem:[%s3142_s3 + $0xe0] sm:$0xff] }
   0xb   :  { %1790 = vmatpush1.bf16.msra.mxu1 %v2505_v26  ;;  %1760 = vmatprep.subr.bf16.mxu0 %v2507_v27  ;;  %v2545_v41 = vpack.c.bf16 %v61_v37, %v57_v36  ;;  %v2557_v45 = vpack.c.bf16 %v63_v42, %v59_v38  ;;  %v58_v46 = vld [vmem:[%s3142_s3 + $0xd0] sm:$0xff]  ;;  %v65_v48 = vld [vmem:[%s3142_s3 + $0x108] sm:$0xff]  ;;  %v67_v50 = vld [vmem:[%s3142_s3 + $0x118] sm:$0xff]  ;;  %v2578_v52 = vpack.c.bf16 %v60_v44, %v56_v43 }
   0xc   :  { %1792 = vmatprep.subr.bf16.mxu1 %v2518_v31  ;;  %v62_v47 = vld [vmem:[%s3142_s3 + $0xf0] sm:$0xff]  ;;  %v69_v49 = vld [vmem:[%s3142_s3 + $0x128] sm:$0xff]  ;;  %v71_v51 = vld [vmem:[%s3142_s3 + $0x138] sm:$0xff] }
   0xd   :  { %v2585_v54 = vpack.c.bf16 %v62_v47, %v58_v46  ;;  %v2587_v55 = vpack.c.bf16 %v69_v49, %v65_v48  ;;  %v64_v56 = vld [vmem:[%s3142_s3 + $0x100] sm:$0xff]  ;;  %v66_v58 = vld [vmem:[%s3142_s3 + $0x110] sm:$0xff]  ;;  %v2599_v59 = vpack.c.bf16 %v71_v51, %v67_v50  ;;  %v73_v61 = vld [vmem:[%s3142_s3 + $0x148] sm:$0xff] }
   0xe   :  { %1762 = vmatpush1.bf16.msra.mxu0 %v2530_v35  ;;  %v68_v57 = vld [vmem:[%s3142_s3 + $0x120] sm:$0xff]  ;;  %v70_v60 = vld [vmem:[%s3142_s3 + $0x130] sm:$0xff]  ;;  %v77_v62 = vld [vmem:[%s3142_s3 + $0x168] sm:$0xff] }
   0xf   :  { %1794 = vmatpush1.bf16.msra.mxu1 %v2543_v40  ;;  %1764 = vmatprep.subr.bf16.mxu0 %v2545_v41  ;;  %v75_v63 = vld [vmem:[%s3142_s3 + $0x158] sm:$0xff]  ;;  %v2617_v1 = vpack.c.bf16 %v68_v57, %v64_v56  ;;  %v2622_v2 = vpack.c.bf16 %v70_v60, %v66_v58  ;;  %v2624_v5 = vpack.c.bf16 %v77_v62, %v73_v61  ;;  %v72_v6 = vld [vmem:[%s3142_s3 + $0x140] sm:$0xff]  ;;  %v74_v10 = vld [vmem:[%s3142_s3 + $0x150] sm:$0xff]  ;;  %v1722_v60 = vsel %vm326_vm2, 1.0, %v3149_v3 }
  0x10   :  { %1796 = vmatprep.subr.bf16.mxu1 %v2557_v45  ;;  %v79_v0 = vld [vmem:[%s3142_s3 + $0x178] sm:$0xff]  ;;  %v76_v7 = vld [vmem:[%s3142_s3 + $0x160] sm:$0xff]  ;;  %v78_v12 = vld [vmem:[%s3142_s3 + $0x170] sm:$0xff]  ;;  %v1734_v62 = vsel %vm875_vm3, 1.0, %v3149_v3 }
  0x11   :  { %v2636_v11 = vpack.c.bf16 %v79_v0, %v75_v63  ;;  %v81_v14 = vld [vmem:[%s3142_s3 + $0x188] sm:$0xff]  ;;  %v83_v16 = vld [vmem:[%s3142_s3 + $0x198] sm:$0xff]  ;;  %v2657_v21 = vpack.c.bf16 %v76_v7, %v72_v6  ;;  %v80_v23 = vld [vmem:[%s3142_s3 + $0x180] sm:$0xff]  ;;  %v2664_v24 = vpack.c.bf16 %v78_v12, %v74_v10  ;;  %v1742_v0 = vsel %vm1241_vm4, 1.0, %v3149_v3 }
  0x12   :  { %1766 = vmatpush1.bf16.msra.mxu0 %v2578_v52  ;;  %v85_v15 = vld [vmem:[%s3142_s3 + $0x1a8] sm:$0xff]  ;;  %v87_v19 = vld [vmem:[%s3142_s3 + $0x1b8] sm:$0xff]  ;;  %v84_v28 = vld [vmem:[%s3142_s3 + $0x1a0] sm:$0xff] }
  0x13   :  { %1798 = vmatpush1.bf16.msra.mxu1 %v2585_v54  ;;  %1768 = vmatprep.subr.bf16.mxu0 %v2587_v55  ;;  %v2666_v25 = vpack.c.bf16 %v85_v15, %v81_v14  ;;  %v82_v29 = vld [vmem:[%s3142_s3 + $0x190] sm:$0xff]  ;;  %v2677_v30 = vld [vmem:[%s3143_s0] sm:$0xff]  ;;  %v2680_v32 = vpack.c.bf16 %v87_v19, %v83_v16  ;;  %v89_v34 = vld [vmem:[%s3142_s3 + $0x1c8] sm:$0xff]  ;;  %v2699_v43 = vpack.c.bf16 %v84_v28, %v80_v23  ;;  %v2784_v14 = vshrl.u32 %v97_v39, 7 }
  0x14   :  { %1800 = vmatprep.subr.bf16.mxu1 %v2599_v59  ;;  %v86_v33 = vld [vmem:[%s3142_s3 + $0x1b0] sm:$0xff]  ;;  %v93_v36 = vld [vmem:[%s3142_s3 + $0x1e8] sm:$0xff]  ;;  %v104_v37 = vmul.f32 %v1718_v20, %v2677_v30  ;;  %v91_v38 = vld [vmem:[%s3142_s3 + $0x1d8] sm:$0xff]  ;;  %v329_v61 = vmul.f32 %v1722_v60, %v2677_v30  ;;  %v878_v63 = vmul.f32 %v1734_v62, %v2677_v30  ;;  %v1244_v10 = vmul.f32 %v1742_v0, %v2677_v30 }
  0x15   :  { %v95_v42 = vld [vmem:[%s3142_s3 + $0x1f8] sm:$0xff]  ;;  %v2704_v46 = vpack.c.bf16 %v86_v33, %v82_v29  ;;  %v2706_v47 = vpack.c.bf16 %v93_v36, %v89_v34  ;;  %v88_v48 = vld [vmem:[%s3142_s3 + $0x1c0] sm:$0xff]  ;;  %v90_v51 = vld [vmem:[%s3142_s3 + $0x1d0] sm:$0xff]  ;;  %3154 = vst [vmem:[#allocation7_spill] sm:$0xff] %v2784_v14  ;;  %v112_v15 = vsub.s32 0, %v2784_v14  ;;  %v116_v19 = vsub.s32 1, %v2784_v14 }
  0x16   :  { %1770 = vmatpush1.bf16.msra.mxu0 %v2617_v1  ;;  %v106_v44 = vsel %vm105_vm1, %v104_v37, 0.0  ;;  %v92_v49 = vld [vmem:[%s3142_s3 + $0x1e0] sm:$0xff]  ;;  %v2715_v50 = vpack.c.bf16 %v95_v42, %v91_v38  ;;  %v94_v56 = vld [vmem:[%s3142_s3 + $0x1f0] sm:$0xff]  ;;  %v330_v6 = vsel %vm105_vm1, %v329_v61, 0.0  ;;  %v879_v7 = vsel %vm105_vm1, %v878_v63, 0.0 }
  0x17   :  { %1802 = vmatpush1.bf16.msra.mxu1 %v2622_v2  ;;  %1772 = vmatprep.subr.bf16.mxu0 %v2624_v5  ;;  %v2724_v57 = vpack.c.bf16 %v92_v49, %v88_v48  ;;  %v2728_v58 = vpack.c.bf16 %v94_v56, %v90_v51  ;;  %v1245_v12 = vsel %vm105_vm1, %v1244_v10, 0.0  ;;  %v30_v16 = vld [vmem:[%s3144_s1] sm:$0xf]  ;;  %v124_v39 = vsub.s32 3, %v2784_v14 }
  0x18   :  { %1804 = vmatprep.subr.bf16.mxu1 %v2636_v11  ;;  %107 = vadd.xlane.f32.xlu0 %v106_v44  ;;  %v2791_v20 = vrot.slane %v30_v16, %v112_v15  ;;  %v31_v28 = vld [vmem:[%s3145_s2] sm:$0xf]  ;;  %v2796_v29 = vrot.slane %v30_v16, %v116_v19  ;;  %v120_v44 = vsub.s32 2, %v2784_v14 }
  0x19   :  { %v2800_v34 = vrot.slane %v31_v28, %v112_v15  ;;  %v2803_v37 = vrot.slane %v31_v28, %v116_v19  ;;  %v2805_v38 = vrot.slane %v30_v16, %v124_v39  ;;  %v2811_v56 = vrot.slane %v31_v28, %v124_v39 }
  0x1a   :  { %1774 = vmatpush1.bf16.msra.mxu0 %v2657_v21  ;;  %v2813_v61 = vrot.slane %v30_v16, %v120_v44  ;;  %v2817_v19 = vrot.slane %v31_v28, %v120_v44 }
  0x1b   :  { %1806 = vmatpush1.bf16.msra.mxu1 %v2664_v24  ;;  %1776 = vmatprep.subr.bf16.mxu0 %v2666_v25 }
  0x1c   :  { %1808 = vmatprep.subr.bf16.mxu1 %v2680_v32  ;;  %331 = vadd.xlane.f32.xlu0 %v330_v6 }
  0x1e   :  { %1778 = vmatpush1.bf16.msra.mxu0 %v2699_v43 }
  0x1f   :  { %1810 = vmatpush1.bf16.msra.mxu1 %v2704_v46  ;;  %1780 = vmatprep.subr.bf16.mxu0 %v2706_v47 }
  0x20   :  { %1812 = vmatprep.subr.bf16.mxu1 %v2715_v50  ;;  %880 = vadd.xlane.f32.xlu0 %v879_v7 }
  0x22   :  { %1782 = vmatpush1.bf16.msra.mxu0 %v2724_v57 }
  0x23   :  { %1814 = vmatpush1.bf16.msra.mxu1 %v2728_v58  ;;  %1816 = vmatprep.subr.bf16.mxu0 %v2440_v4 }
  0x24   :  { %1848 = vmatprep.subr.bf16.mxu1 %v2451_v8  ;;  %1246 = vadd.xlane.f32.xlu0 %v1245_v12 }
  0x25   :  { %224 = vmatmul.mubr.f32.vlgmr.msra.gmra.mrb[0].mxu0 %v3149_v3 }
  0x26   :  { %295 = vmatmul.mubr.f32.vlgmr.msra.gmra.mrb[0].mxu1 %v3149_v3  ;;  %1818 = vmatpush1.bf16.msra.mxu0 %v2453_v9 }
  0x27   :  { %1850 = vmatpush1.bf16.msra.mxu1 %v2465_v13  ;;  %1820 = vmatprep.subr.bf16.mxu0 %v2478_v17 }
  0x28   :  { %1852 = vmatprep.subr.bf16.mxu1 %v2480_v18  ;;  %405 = vmatprep.mubr.f32.mxu0 %v3149_v3 }
  0x29   :  { %476 = vmatprep.mubr.f32.mxu1 %v3149_v3 }
  0x2a   :  { %1822 = vmatpush1.bf16.msra.mxu0 %v2492_v22 }
  0x2b   :  { %1854 = vmatpush1.bf16.msra.mxu1 %v2505_v26  ;;  %1824 = vmatprep.subr.bf16.mxu0 %v2507_v27 }
  0x2c   :  { %1856 = vmatprep.subr.bf16.mxu1 %v2518_v31 }
  0x2e   :  { %1826 = vmatpush1.bf16.msra.mxu0 %v2530_v35 }
  0x2f   :  { %1858 = vmatpush1.bf16.msra.mxu1 %v2543_v40  ;;  %1828 = vmatprep.subr.bf16.mxu0 %v2545_v41 }
  0x30   :  { %1860 = vmatprep.subr.bf16.mxu1 %v2557_v45 }
  0x32   :  { %1830 = vmatpush1.bf16.msra.mxu0 %v2578_v52 }
  0x33   :  { %1862 = vmatpush1.bf16.msra.mxu1 %v2585_v54  ;;  %1832 = vmatprep.subr.bf16.mxu0 %v2587_v55 }
  0x34   :  { %1864 = vmatprep.subr.bf16.mxu1 %v2599_v59 }
  0x36   :  { %1834 = vmatpush1.bf16.msra.mxu0 %v2617_v1 }
  0x37   :  { %1866 = vmatpush1.bf16.msra.mxu1 %v2622_v2  ;;  %1836 = vmatprep.subr.bf16.mxu0 %v2624_v5 }
  0x38   :  { %1868 = vmatprep.subr.bf16.mxu1 %v2636_v11 }
  0x3a   :  { %1838 = vmatpush1.bf16.msra.mxu0 %v2657_v21 }
  0x3b   :  { %1870 = vmatpush1.bf16.msra.mxu1 %v2664_v24  ;;  %1840 = vmatprep.subr.bf16.mxu0 %v2666_v25 }
  0x3c   :  { %1872 = vmatprep.subr.bf16.mxu1 %v2680_v32 }
  0x3e   :  { %1842 = vmatpush1.bf16.msra.mxu0 %v2699_v43 }
  0x3f   :  { %1874 = vmatpush1.bf16.msra.mxu1 %v2704_v46  ;;  %1844 = vmatprep.subr.bf16.mxu0 %v2706_v47 }
  0x40   :  { %1876 = vmatprep.subr.bf16.mxu1 %v2715_v50 }
  0x42   :  { %1846 = vmatpush1.bf16.msra.mxu0 %v2724_v57 }
  0x43   :  { %1878 = vmatpush1.bf16.msra.mxu1 %v2728_v58  ;;  %1880 = vmatprep.subr.bf16.mxu0 %v2440_v4 }
  0x44   :  { %1912 = vmatprep.subr.bf16.mxu1 %v2451_v8 }
  0xa5   :  { %v108_v23 = vpop.xlane.xlu0 %107 }
  0xa6   :  { %v130_v33 = vmul.f32 %v2791_v20, %v108_v23  ;;  %v131_v36 = vmul.f32 %v2796_v29, %v108_v23  ;;  %v133_v51 = vmul.f32 %v2805_v38, %v108_v23  ;;  %v132_v15 = vmul.f32 %v2813_v61, %v108_v23 }
  0xa8   :  { %v155_v42 = vadd.f32 %v2800_v34, %v130_v33  ;;  %v156_v48 = vadd.f32 %v2803_v37, %v131_v36  ;;  %v158_v12 = vadd.f32 %v2811_v56, %v133_v51  ;;  %v157_v39 = vadd.f32 %v2817_v19, %v132_v15 }
  0xa9   :  { %v3155_v15 = vmov 0.0  }
  0xf8   :  { %v225_v49 = vpop.f32.mrb[0].mxu0 }
  0xf9   :  { %v226_v60 = vadd.f32 %v225_v49, %v155_v42  ;;  %v296_v62 = vpop.f32.mrb[0].mxu1  ;;  %v227_v63 = vpop.f32.mrb[1].mxu0 }
  0xfa   :  { %v228_v0 = vadd.f32 %v227_v63, %v156_v48  ;;  %v298_v6 = vpop.f32.mrb[1].mxu1  ;;  %v297_v16 = vadd.f32 %v296_v62, %v157_v39 }
  0xfb   :  { %v1719_v7 = vmul.f32 -1.442695, %v226_v60  ;;  %v299_v33 = vadd.f32 %v298_v6, %v158_v12 }
  0xfc   :  { %v1720_v10 = vmul.f32 -1.442695, %v228_v0 }
  0xfd   :  { %2264 = vpow2.f32 %v1719_v7  ;;  %v1721_v36 = vmul.f32 -1.442695, %v299_v33  ;;  %v1726_v33 = vsel %vm509_vm5, 1.0, %v3155_v15 }
  0xfe   :  { %2266 = vpow2.f32 %v1720_v10  ;;  %v2826_v10 = vld [vmem:[%s3146_s4] ss:$0 sm:$0xff]  ;;  %v512_v39 = vmul.f32 %v1726_v33, %v2677_v30 }
  0xff   :  { %2268 = vpow2.f32 %v1721_v36 }
 0x100   :  { %2270 = vtanh.f32 %v297_v16  ;;  %v513_v36 = vsel %vm105_vm1, %v512_v39, 0.0  ;;  %v1730_v16 = vsel %vm692_vm6, 1.0, %v3155_v15 }
 0x101   :  { %514 = vadd.xlane.f32.xlu1 %v513_v36 }
 0x107   :  { %v2265_v42 = vpop.eup %2264 }
 0x108   :  { %v2267_v49 = vpop.eup %2266  ;;  %v304_v3 = vadd.f32 1.0, %v2265_v42  ;;  %v1738_v42 = vsel %vm1058_vm7, 1.0, %v3155_v15 }
 0x109   :  { %v310_v48 = vadd.f32 1.0, %v2267_v49  ;;  %v2269_v51 = vpop.eup %2268  ;;  %v695_v49 = vmul.f32 %v1730_v16, %v2677_v30 }
 0x10a   :  { %2272 = vrcp.f32 %v304_v3  ;;  %v2271_v60 = vpop.eup %2270  ;;  %v317_v44 = vadd.f32 1.0, %v2269_v51 }
 0x10b   :  { %2274 = vrcp.f32 %v310_v48  ;;  %v1061_v48 = vmul.f32 %v1738_v42, %v2677_v30  ;;  %v696_v51 = vsel %vm105_vm1, %v695_v49, 0.0 }
 0x10c   :  { %2276 = vrcp.f32 %v317_v44  ;;  %697 = vadd.xlane.f32.xlu1 %v696_v51  ;;  %v332_v44 = vpop.xlane.xlu0 %331 }
 0x10d   :  { %v336_v39 = vmul.f32 %v332_v44, %v2805_v38 }
 0x10f   :  { %v340_v51 = vadd.f32 %v336_v39, %v2811_v56 }
 0x114   :  { %v2273_v63 = vpop.eup %2272 }
 0x115   :  { %v2275_v23 = vpop.eup %2274  ;;  %v321_v28 = vmul.f32 %v2273_v63, %v2271_v60  ;;  %v1746_v60 = vsel %vm1424_vm8, 1.0, %v3155_v15  ;;  %v1062_v63 = vsel %vm105_vm1, %v1061_v48, 0.0 }
 0x116   :  { %v320_v0 = vmul.f32 0.0, %v2275_v23  ;;  %v2277_v62 = vpop.eup %2276  ;;  %v1427_v23 = vmul.f32 %v1746_v60, %v2677_v30  ;;  %1063 = vadd.xlane.f32.xlu1 %v1062_v63  ;;  %v335_v60 = vmul.f32 %v332_v44, %v2813_v61 }
 0x118   :  { %v2820_v6 = vadd.f32 %v321_v28, %v320_v0  ;;  %v1428_v28 = vsel %vm105_vm1, %v1427_v23, 0.0  ;;  %v333_v0 = vmul.f32 %v332_v44, %v2791_v20  ;;  %v339_v23 = vadd.f32 %v335_v60, %v2817_v19 }
 0x11a   :  { %2278 = vtanh.f32 %v2820_v6  ;;  %1429 = vadd.xlane.f32.xlu1 %v1428_v28 }
 0x124   :  { %v2279_v7 = vpop.eup %2278 }
 0x125   :  { %v324_v3 = vmul.f32 %v2279_v7, %v2277_v62  ;;  %v334_v62 = vmul.f32 %v332_v44, %v2796_v29  ;;  %v337_v7 = vadd.f32 %v333_v0, %v2800_v34 }
 0x127   :  { %406 = vmatmul.mubr.f32.vlgmr.msra.gmra.mrb[2].mxu0 %v324_v3  ;;  %477 = vmatmul.mubr.f32.vlgmr.msra.gmra.mrb[2].mxu1 %v324_v3  ;;  %v1624_v12 = vmul.f32 %v2826_v10, %v324_v3  ;;  %v338_v3 = vadd.f32 %v334_v62, %v2803_v37 }
 0x128   :  { %1882 = vmatpush1.bf16.msra.mxu0 %v2453_v9  ;;  %1914 = vmatpush1.bf16.msra.mxu1 %v2465_v13 }
 0x129   :  { %1632 = vadd.xlane.f32.xlu0 %v1624_v12  ;;  %1884 = vmatprep.subr.bf16.mxu0 %v2478_v17 }
 0x12a   :  { %1916 = vmatprep.subr.bf16.mxu1 %v2480_v18  ;;  %588 = vmatprep.mubr.f32.mxu0 %v3155_v15 }
 0x12b   :  { %659 = vmatprep.mubr.f32.mxu1 %v3155_v15 }
 0x12c   :  { %1886 = vmatpush1.bf16.msra.mxu0 %v2492_v22  ;;  %1918 = vmatpush1.bf16.msra.mxu1 %v2505_v26 }
 0x12d   :  { %1888 = vmatprep.subr.bf16.mxu0 %v2507_v27  ;;  %1920 = vmatprep.subr.bf16.mxu1 %v2518_v31 }
 0x130   :  { %1890 = vmatpush1.bf16.msra.mxu0 %v2530_v35  ;;  %1922 = vmatpush1.bf16.msra.mxu1 %v2543_v40 }
 0x131   :  { %1892 = vmatprep.subr.bf16.mxu0 %v2545_v41  ;;  %1924 = vmatprep.subr.bf16.mxu1 %v2557_v45 }
 0x134   :  { %1894 = vmatpush1.bf16.msra.mxu0 %v2578_v52  ;;  %1926 = vmatpush1.bf16.msra.mxu1 %v2585_v54 }
 0x135   :  { %1896 = vmatprep.subr.bf16.mxu0 %v2587_v55  ;;  %1928 = vmatprep.subr.bf16.mxu1 %v2599_v59 }
 0x138   :  { %1898 = vmatpush1.bf16.msra.mxu0 %v2617_v1  ;;  %1930 = vmatpush1.bf16.msra.mxu1 %v2622_v2 }
 0x139   :  { %1900 = vmatprep.subr.bf16.mxu0 %v2624_v5  ;;  %1932 = vmatprep.subr.bf16.mxu1 %v2636_v11 }
 0x13c   :  { %1902 = vmatpush1.bf16.msra.mxu0 %v2657_v21  ;;  %1934 = vmatpush1.bf16.msra.mxu1 %v2664_v24 }
 0x13d   :  { %1904 = vmatprep.subr.bf16.mxu0 %v2666_v25  ;;  %1936 = vmatprep.subr.bf16.mxu1 %v2680_v32 }
 0x140   :  { %1906 = vmatpush1.bf16.msra.mxu0 %v2699_v43  ;;  %1938 = vmatpush1.bf16.msra.mxu1 %v2704_v46 }
 0x141   :  { %1908 = vmatprep.subr.bf16.mxu0 %v2706_v47  ;;  %1940 = vmatprep.subr.bf16.mxu1 %v2715_v50 }
 0x144   :  { %1910 = vmatpush1.bf16.msra.mxu0 %v2724_v57  ;;  %1942 = vmatpush1.bf16.msra.mxu1 %v2728_v58 }
 0x145   :  { %1944 = vmatprep.subr.bf16.mxu0 %v2440_v4  ;;  %1976 = vmatprep.subr.bf16.mxu1 %v2451_v8 }
 0x1fa   :  { %v407_v12 = vpop.f32.mrb[2].mxu0  ;;  %v478_v33 = vpop.f32.mrb[2].mxu1 }
 0x1fb   :  { %v408_v36 = vadd.f32 %v407_v12, %v337_v7  ;;  %v409_v16 = vpop.f32.mrb[3].mxu0  ;;  %v480_v30 = vpop.f32.mrb[3].mxu1  ;;  %v479_v0 = vadd.f32 %v478_v33, %v339_v23 }
 0x1fc   :  { %v410_v42 = vadd.f32 %v409_v16, %v338_v3  ;;  %v481_v63 = vadd.f32 %v480_v30, %v340_v51 }
 0x1fd   :  { %v1723_v49 = vmul.f32 -1.442695, %v408_v36 }
 0x1fe   :  { %v1724_v48 = vmul.f32 -1.442695, %v410_v42  ;;  %v1725_v28 = vmul.f32 -1.442695, %v481_v63 }
 0x1ff   :  { %2280 = vpow2.f32 %v1723_v49 }
 0x200   :  { %2282 = vpow2.f32 %v1724_v48 }
 0x201   :  { %2284 = vpow2.f32 %v1725_v28 }
 0x202   :  { %2286 = vtanh.f32 %v479_v0 }
 0x209   :  { %v2281_v62 = vpop.eup %2280 }
 0x20a   :  { %v2283_v53 = vpop.eup %2282  ;;  %v486_v14 = vadd.f32 1.0, %v2281_v62 }
 0x20b   :  { %v492_v7 = vadd.f32 1.0, %v2283_v53  ;;  %v2285_v3 = vpop.eup %2284 }
 0x20c   :  { %2288 = vrcp.f32 %v486_v14  ;;  %v2287_v12 = vpop.eup %2286  ;;  %v499_v44 = vadd.f32 1.0, %v2285_v3  ;;  %v515_v14 = vpop.xlane.xlu1 %514 }
 0x20d   :  { %2290 = vrcp.f32 %v492_v7  ;;  %v517_v51 = vmul.f32 %v515_v14, %v2796_v29  ;;  %v519_v0 = vmul.f32 %v515_v14, %v2805_v38 }
 0x20e   :  { %2292 = vrcp.f32 %v499_v44  ;;  %v518_v44 = vmul.f32 %v515_v14, %v2813_v61 }
 0x20f   :  { %v521_v63 = vadd.f32 %v517_v51, %v2803_v37 }
 0x216   :  { %v2289_v39 = vpop.eup %2288 }
 0x217   :  { %v2291_v36 = vpop.eup %2290  ;;  %v503_v16 = vmul.f32 %v2289_v39, %v2287_v12 }
 0x218   :  { %v502_v30 = vmul.f32 %v2291_v36, %v2820_v6  ;;  %v2293_v33 = vpop.eup %2292  ;;  %v516_v6 = vmul.f32 %v515_v14, %v2791_v20 }
 0x21a   :  { %v2888_v42 = vadd.f32 %v503_v16, %v502_v30  ;;  %v520_v60 = vadd.f32 %v516_v6, %v2800_v34  ;;  %v523_v16 = vadd.f32 %v519_v0, %v2811_v56 }
 0x21c   :  { %2294 = vtanh.f32 %v2888_v42 }
 0x226   :  { %v2295_v49 = vpop.eup %2294 }
 0x227   :  { %v506_v48 = vmul.f32 %v2295_v49, %v2293_v33  ;;  %v522_v33 = vadd.f32 %v518_v44, %v2817_v19 }
 0x229   :  { %589 = vmatmul.mubr.f32.vlgmr.msra.gmra.mrb[4].mxu0 %v506_v48  ;;  %660 = vmatmul.mubr.f32.vlgmr.msra.gmra.mrb[4].mxu1 %v506_v48  ;;  %v1625_v53 = vmul.f32 %v2826_v10, %v506_v48 }
 0x22a   :  { %1946 = vmatpush1.bf16.msra.mxu0 %v2453_v9  ;;  %1978 = vmatpush1.bf16.msra.mxu1 %v2465_v13 }
 0x22b   :  { %1634 = vadd.xlane.f32.xlu1 %v1625_v53  ;;  %1948 = vmatprep.subr.bf16.mxu0 %v2478_v17 }
 0x22c   :  { %1980 = vmatprep.subr.bf16.mxu1 %v2480_v18  ;;  %771 = vmatprep.mubr.f32.mxu0 %v3155_v15 }
 0x22d   :  { %842 = vmatprep.mubr.f32.mxu1 %v3155_v15 }
 0x22e   :  { %1950 = vmatpush1.bf16.msra.mxu0 %v2492_v22  ;;  %1982 = vmatpush1.bf16.msra.mxu1 %v2505_v26 }
 0x22f   :  { %1952 = vmatprep.subr.bf16.mxu0 %v2507_v27  ;;  %1984 = vmatprep.subr.bf16.mxu1 %v2518_v31 }
 0x232   :  { %1954 = vmatpush1.bf16.msra.mxu0 %v2530_v35  ;;  %1986 = vmatpush1.bf16.msra.mxu1 %v2543_v40 }
 0x233   :  { %1956 = vmatprep.subr.bf16.mxu0 %v2545_v41  ;;  %1988 = vmatprep.subr.bf16.mxu1 %v2557_v45 }
 0x236   :  { %1958 = vmatpush1.bf16.msra.mxu0 %v2578_v52  ;;  %1990 = vmatpush1.bf16.msra.mxu1 %v2585_v54 }
 0x237   :  { %1960 = vmatprep.subr.bf16.mxu0 %v2587_v55  ;;  %1992 = vmatprep.subr.bf16.mxu1 %v2599_v59 }
 0x23a   :  { %1962 = vmatpush1.bf16.msra.mxu0 %v2617_v1  ;;  %1994 = vmatpush1.bf16.msra.mxu1 %v2622_v2 }
 0x23b   :  { %1964 = vmatprep.subr.bf16.mxu0 %v2624_v5  ;;  %1996 = vmatprep.subr.bf16.mxu1 %v2636_v11 }
 0x23e   :  { %1966 = vmatpush1.bf16.msra.mxu0 %v2657_v21  ;;  %1998 = vmatpush1.bf16.msra.mxu1 %v2664_v24 }
 0x23f   :  { %1968 = vmatprep.subr.bf16.mxu0 %v2666_v25  ;;  %2000 = vmatprep.subr.bf16.mxu1 %v2680_v32 }
 0x242   :  { %1970 = vmatpush1.bf16.msra.mxu0 %v2699_v43  ;;  %2002 = vmatpush1.bf16.msra.mxu1 %v2704_v46 }
 0x243   :  { %1972 = vmatprep.subr.bf16.mxu0 %v2706_v47  ;;  %2004 = vmatprep.subr.bf16.mxu1 %v2715_v50 }
 0x246   :  { %1974 = vmatpush1.bf16.msra.mxu0 %v2724_v57  ;;  %2006 = vmatpush1.bf16.msra.mxu1 %v2728_v58 }
 0x247   :  { %2008 = vmatprep.subr.bf16.mxu0 %v2440_v4  ;;  %2040 = vmatprep.subr.bf16.mxu1 %v2451_v8 }
 0x2fc   :  { %v590_v23 = vpop.f32.mrb[4].mxu0  ;;  %v661_v28 = vpop.f32.mrb[4].mxu1 }
 0x2fd   :  { %v591_v62 = vadd.f32 %v590_v23, %v520_v60  ;;  %v592_v7 = vpop.f32.mrb[5].mxu0  ;;  %v663_v3 = vpop.f32.mrb[5].mxu1  ;;  %v662_v48 = vadd.f32 %v661_v28, %v522_v33 }
 0x2fe   :  { %v593_v12 = vadd.f32 %v592_v7, %v521_v63  ;;  %v664_v30 = vadd.f32 %v663_v3, %v523_v16 }
 0x2ff   :  { %v1727_v39 = vmul.f32 -1.442695, %v591_v62 }
 0x300   :  { %v1728_v36 = vmul.f32 -1.442695, %v593_v12  ;;  %v1729_v49 = vmul.f32 -1.442695, %v664_v30 }
 0x301   :  { %2296 = vpow2.f32 %v1727_v39 }
 0x302   :  { %2298 = vpow2.f32 %v1728_v36 }
 0x303   :  { %2300 = vpow2.f32 %v1729_v49 }
 0x304   :  { %2302 = vtanh.f32 %v662_v48 }
 0x30b   :  { %v2297_v53 = vpop.eup %2296 }
 0x30c   :  { %v2299_v6 = vpop.eup %2298  ;;  %v669_v51 = vadd.f32 1.0, %v2297_v53 }
 0x30d   :  { %v675_v60 = vadd.f32 1.0, %v2299_v6  ;;  %v2301_v63 = vpop.eup %2300 }
 0x30e   :  { %2304 = vrcp.f32 %v669_v51  ;;  %v2303_v23 = vpop.eup %2302  ;;  %v682_v14 = vadd.f32 1.0, %v2301_v63 }
 0x30f   :  { %2306 = vrcp.f32 %v675_v60 }
 0x310   :  { %2308 = vrcp.f32 %v682_v14 }
 0x318   :  { %v2305_v0 = vpop.eup %2304 }
 0x319   :  { %v2307_v62 = vpop.eup %2306  ;;  %v686_v7 = vmul.f32 %v2305_v0, %v2303_v23 }
 0x31a   :  { %v685_v3 = vmul.f32 %v2307_v62, %v2888_v42  ;;  %v2309_v28 = vpop.eup %2308  ;;  %v698_v42 = vpop.xlane.xlu1 %697 }
 0x31b   :  { %v699_v44 = vmul.f32 %v698_v42, %v2791_v20  ;;  %v700_v30 = vmul.f32 %v698_v42, %v2796_v29  ;;  %v702_v6 = vmul.f32 %v698_v42, %v2805_v38  ;;  %v701_v14 = vmul.f32 %v698_v42, %v2813_v61 }
 0x31c   :  { %v2935_v12 = vadd.f32 %v686_v7, %v685_v3 }
 0x31d   :  { %v703_v33 = vadd.f32 %v699_v44, %v2800_v34  ;;  %v704_v49 = vadd.f32 %v700_v30, %v2803_v37  ;;  %v706_v7 = vadd.f32 %v702_v6, %v2811_v56 }
 0x31e   :  { %2310 = vtanh.f32 %v2935_v12 }
 0x328   :  { %v2311_v39 = vpop.eup %2310 }
 0x329   :  { %v689_v36 = vmul.f32 %v2311_v39, %v2309_v28  ;;  %v705_v28 = vadd.f32 %v701_v14, %v2817_v19 }
 0x32b   :  { %772 = vmatmul.mubr.f32.vlgmr.msra.gmra.mrb[6].mxu0 %v689_v36  ;;  %843 = vmatmul.mubr.f32.vlgmr.msra.gmra.mrb[6].mxu1 %v689_v36  ;;  %v1626_v16 = vmul.f32 %v2826_v10, %v689_v36 }
 0x32c   :  { %2010 = vmatpush1.bf16.msra.mxu0 %v2453_v9  ;;  %2042 = vmatpush1.bf16.msra.mxu1 %v2465_v13 }
 0x32d   :  { %1636 = vadd.xlane.f32.xlu0 %v1626_v16  ;;  %2012 = vmatprep.subr.bf16.mxu0 %v2478_v17 }
 0x32e   :  { %2044 = vmatprep.subr.bf16.mxu1 %v2480_v18  ;;  %954 = vmatprep.mubr.f32.mxu0 %v3155_v15 }
 0x32f   :  { %1025 = vmatprep.mubr.f32.mxu1 %v3155_v15 }
 0x330   :  { %2014 = vmatpush1.bf16.msra.mxu0 %v2492_v22  ;;  %2046 = vmatpush1.bf16.msra.mxu1 %v2505_v26 }
 0x331   :  { %2016 = vmatprep.subr.bf16.mxu0 %v2507_v27  ;;  %2048 = vmatprep.subr.bf16.mxu1 %v2518_v31 }
 0x334   :  { %2018 = vmatpush1.bf16.msra.mxu0 %v2530_v35  ;;  %2050 = vmatpush1.bf16.msra.mxu1 %v2543_v40 }
 0x335   :  { %2020 = vmatprep.subr.bf16.mxu0 %v2545_v41  ;;  %2052 = vmatprep.subr.bf16.mxu1 %v2557_v45 }
 0x338   :  { %2022 = vmatpush1.bf16.msra.mxu0 %v2578_v52  ;;  %2054 = vmatpush1.bf16.msra.mxu1 %v2585_v54 }
 0x339   :  { %2024 = vmatprep.subr.bf16.mxu0 %v2587_v55  ;;  %2056 = vmatprep.subr.bf16.mxu1 %v2599_v59 }
 0x33c   :  { %2026 = vmatpush1.bf16.msra.mxu0 %v2617_v1  ;;  %2058 = vmatpush1.bf16.msra.mxu1 %v2622_v2 }
 0x33d   :  { %2028 = vmatprep.subr.bf16.mxu0 %v2624_v5  ;;  %2060 = vmatprep.subr.bf16.mxu1 %v2636_v11 }
 0x340   :  { %2030 = vmatpush1.bf16.msra.mxu0 %v2657_v21  ;;  %2062 = vmatpush1.bf16.msra.mxu1 %v2664_v24 }
 0x341   :  { %2032 = vmatprep.subr.bf16.mxu0 %v2666_v25  ;;  %2064 = vmatprep.subr.bf16.mxu1 %v2680_v32 }
 0x344   :  { %2034 = vmatpush1.bf16.msra.mxu0 %v2699_v43  ;;  %2066 = vmatpush1.bf16.msra.mxu1 %v2704_v46 }
 0x345   :  { %2036 = vmatprep.subr.bf16.mxu0 %v2706_v47  ;;  %2068 = vmatprep.subr.bf16.mxu1 %v2715_v50 }
 0x348   :  { %2038 = vmatpush1.bf16.msra.mxu0 %v2724_v57  ;;  %2070 = vmatpush1.bf16.msra.mxu1 %v2728_v58 }
 0x349   :  { %2072 = vmatprep.subr.bf16.mxu0 %v2440_v4  ;;  %2104 = vmatprep.subr.bf16.mxu1 %v2451_v8 }
 0x3fe   :  { %v773_v48 = vpop.f32.mrb[6].mxu0  ;;  %v844_v53 = vpop.f32.mrb[6].mxu1 }
 0x3ff   :  { %v774_v51 = vadd.f32 %v773_v48, %v703_v33  ;;  %v775_v60 = vpop.f32.mrb[7].mxu0  ;;  %v846_v63 = vpop.f32.mrb[7].mxu1  ;;  %v845_v36 = vadd.f32 %v844_v53, %v705_v28 }
 0x400   :  { %v776_v23 = vadd.f32 %v775_v60, %v704_v49  ;;  %v847_v3 = vadd.f32 %v846_v63, %v706_v7 }
 0x401   :  { %v1731_v0 = vmul.f32 -1.442695, %v774_v51 }
 0x402   :  { %v1732_v62 = vmul.f32 -1.442695, %v776_v23  ;;  %v1733_v39 = vmul.f32 -1.442695, %v847_v3 }
 0x403   :  { %2312 = vpow2.f32 %v1731_v0 }
 0x404   :  { %2314 = vpow2.f32 %v1732_v62 }
 0x405   :  { %2316 = vpow2.f32 %v1733_v39 }
 0x406   :  { %2318 = vtanh.f32 %v845_v36 }
 0x40d   :  { %v2313_v16 = vpop.eup %2312 }
 0x40e   :  { %v2315_v44 = vpop.eup %2314  ;;  %v852_v30 = vadd.f32 1.0, %v2313_v16 }
 0x40f   :  { %v858_v33 = vadd.f32 1.0, %v2315_v44  ;;  %v2317_v49 = vpop.eup %2316 }
 0x410   :  { %2320 = vrcp.f32 %v852_v30  ;;  %v2319_v48 = vpop.eup %2318  ;;  %v865_v42 = vadd.f32 1.0, %v2317_v49 }
 0x411   :  { %2322 = vrcp.f32 %v858_v33 }
 0x412   :  { %2324 = vrcp.f32 %v865_v42 }
 0x41a   :  { %v2321_v6 = vpop.eup %2320 }
 0x41b   :  { %v2323_v51 = vpop.eup %2322  ;;  %v869_v60 = vmul.f32 %v2321_v6, %v2319_v48 }
 0x41c   :  { %v868_v63 = vmul.f32 %v2323_v51, %v2935_v12  ;;  %v2325_v53 = vpop.eup %2324  ;;  %v881_v12 = vpop.xlane.xlu0 %880 }
 0x41d   :  { %v882_v14 = vmul.f32 %v881_v12, %v2791_v20  ;;  %v883_v3 = vmul.f32 %v881_v12, %v2796_v29  ;;  %v885_v44 = vmul.f32 %v881_v12, %v2805_v38  ;;  %v884_v42 = vmul.f32 %v881_v12, %v2813_v61 }
 0x41e   :  { %v2982_v23 = vadd.f32 %v869_v60, %v868_v63 }
 0x41f   :  { %v886_v28 = vadd.f32 %v882_v14, %v2800_v34  ;;  %v887_v39 = vadd.f32 %v883_v3, %v2803_v37  ;;  %v889_v60 = vadd.f32 %v885_v44, %v2811_v56 }
 0x420   :  { %2326 = vtanh.f32 %v2982_v23 }
 0x42a   :  { %v2327_v0 = vpop.eup %2326 }
 0x42b   :  { %v872_v62 = vmul.f32 %v2327_v0, %v2325_v53  ;;  %v888_v53 = vadd.f32 %v884_v42, %v2817_v19 }
 0x42d   :  { %955 = vmatmul.mubr.f32.vlgmr.msra.gmra.mrb[8].mxu0 %v872_v62  ;;  %1026 = vmatmul.mubr.f32.vlgmr.msra.gmra.mrb[8].mxu1 %v872_v62  ;;  %v1627_v7 = vmul.f32 %v2826_v10, %v872_v62 }
 0x42e   :  { %2074 = vmatpush1.bf16.msra.mxu0 %v2453_v9  ;;  %2106 = vmatpush1.bf16.msra.mxu1 %v2465_v13 }
 0x42f   :  { %1638 = vadd.xlane.f32.xlu1 %v1627_v7  ;;  %2076 = vmatprep.subr.bf16.mxu0 %v2478_v17 }
 0x430   :  { %2108 = vmatprep.subr.bf16.mxu1 %v2480_v18  ;;  %1137 = vmatprep.mubr.f32.mxu0 %v3155_v15 }
 0x431   :  { %1208 = vmatprep.mubr.f32.mxu1 %v3155_v15 }
 0x432   :  { %2078 = vmatpush1.bf16.msra.mxu0 %v2492_v22  ;;  %2110 = vmatpush1.bf16.msra.mxu1 %v2505_v26 }
 0x433   :  { %2080 = vmatprep.subr.bf16.mxu0 %v2507_v27  ;;  %2112 = vmatprep.subr.bf16.mxu1 %v2518_v31 }
 0x436   :  { %2082 = vmatpush1.bf16.msra.mxu0 %v2530_v35  ;;  %2114 = vmatpush1.bf16.msra.mxu1 %v2543_v40 }
 0x437   :  { %2084 = vmatprep.subr.bf16.mxu0 %v2545_v41  ;;  %2116 = vmatprep.subr.bf16.mxu1 %v2557_v45 }
 0x43a   :  { %2086 = vmatpush1.bf16.msra.mxu0 %v2578_v52  ;;  %2118 = vmatpush1.bf16.msra.mxu1 %v2585_v54 }
 0x43b   :  { %2088 = vmatprep.subr.bf16.mxu0 %v2587_v55  ;;  %2120 = vmatprep.subr.bf16.mxu1 %v2599_v59 }
 0x43e   :  { %2090 = vmatpush1.bf16.msra.mxu0 %v2617_v1  ;;  %2122 = vmatpush1.bf16.msra.mxu1 %v2622_v2 }
 0x43f   :  { %2092 = vmatprep.subr.bf16.mxu0 %v2624_v5  ;;  %2124 = vmatprep.subr.bf16.mxu1 %v2636_v11 }
 0x442   :  { %2094 = vmatpush1.bf16.msra.mxu0 %v2657_v21  ;;  %2126 = vmatpush1.bf16.msra.mxu1 %v2664_v24 }
 0x443   :  { %2096 = vmatprep.subr.bf16.mxu0 %v2666_v25  ;;  %2128 = vmatprep.subr.bf16.mxu1 %v2680_v32 }
 0x446   :  { %2098 = vmatpush1.bf16.msra.mxu0 %v2699_v43  ;;  %2130 = vmatpush1.bf16.msra.mxu1 %v2704_v46 }
 0x447   :  { %2100 = vmatprep.subr.bf16.mxu0 %v2706_v47  ;;  %2132 = vmatprep.subr.bf16.mxu1 %v2715_v50 }
 0x44a   :  { %2102 = vmatpush1.bf16.msra.mxu0 %v2724_v57  ;;  %2134 = vmatpush1.bf16.msra.mxu1 %v2728_v58 }
 0x44b   :  { %2136 = vmatprep.subr.bf16.mxu0 %v2440_v4  ;;  %2168 = vmatprep.subr.bf16.mxu1 %v2451_v8 }
 0x500   :  { %v956_v36 = vpop.f32.mrb[8].mxu0  ;;  %v1027_v16 = vpop.f32.mrb[8].mxu1 }
 0x501   :  { %v957_v30 = vadd.f32 %v956_v36, %v886_v28  ;;  %v958_v33 = vpop.f32.mrb[9].mxu0  ;;  %v1029_v49 = vpop.f32.mrb[9].mxu1  ;;  %v1028_v62 = vadd.f32 %v1027_v16, %v888_v53 }
 0x502   :  { %v959_v48 = vadd.f32 %v958_v33, %v887_v39  ;;  %v1030_v63 = vadd.f32 %v1029_v49, %v889_v60 }
 0x503   :  { %v1735_v6 = vmul.f32 -1.442695, %v957_v30 }
 0x504   :  { %v1736_v51 = vmul.f32 -1.442695, %v959_v48  ;;  %v1737_v0 = vmul.f32 -1.442695, %v1030_v63 }
 0x505   :  { %2328 = vpow2.f32 %v1735_v6 }
 0x506   :  { %2330 = vpow2.f32 %v1736_v51 }
 0x507   :  { %2332 = vpow2.f32 %v1737_v0 }
 0x508   :  { %2334 = vtanh.f32 %v1028_v62 }
 0x50f   :  { %v2329_v7 = vpop.eup %2328 }
 0x510   :  { %v2331_v14 = vpop.eup %2330  ;;  %v1035_v3 = vadd.f32 1.0, %v2329_v7 }
 0x511   :  { %v1041_v28 = vadd.f32 1.0, %v2331_v14  ;;  %v2333_v39 = vpop.eup %2332 }
 0x512   :  { %2336 = vrcp.f32 %v1035_v3  ;;  %v2335_v36 = vpop.eup %2334  ;;  %v1048_v12 = vadd.f32 1.0, %v2333_v39 }
 0x513   :  { %2338 = vrcp.f32 %v1041_v28 }
 0x514   :  { %2340 = vrcp.f32 %v1048_v12 }
 0x51c   :  { %v2337_v44 = vpop.eup %2336 }
 0x51d   :  { %v2339_v30 = vpop.eup %2338  ;;  %v1052_v33 = vmul.f32 %v2337_v44, %v2335_v36 }
 0x51e   :  { %v1051_v49 = vmul.f32 %v2339_v30, %v2982_v23  ;;  %v2341_v16 = vpop.eup %2340  ;;  %v1064_v23 = vpop.xlane.xlu1 %1063 }
 0x51f   :  { %v1065_v42 = vmul.f32 %v1064_v23, %v2791_v20  ;;  %v1066_v63 = vmul.f32 %v1064_v23, %v2796_v29  ;;  %v1068_v14 = vmul.f32 %v1064_v23, %v2805_v38  ;;  %v1067_v30 = vmul.f32 %v1064_v23, %v2813_v61 }
 0x520   :  { %v3029_v48 = vadd.f32 %v1052_v33, %v1051_v49 }
 0x521   :  { %v1069_v53 = vadd.f32 %v1065_v42, %v2800_v34  ;;  %v1070_v0 = vadd.f32 %v1066_v63, %v2803_v37  ;;  %v1071_v12 = vadd.f32 %v1067_v30, %v2817_v19 }
 0x522   :  { %2342 = vtanh.f32 %v3029_v48 }
 0x52c   :  { %v2343_v6 = vpop.eup %2342 }
 0x52d   :  { %v1055_v51 = vmul.f32 %v2343_v6, %v2341_v16 }
 0x52f   :  { %1138 = vmatmul.mubr.f32.vlgmr.msra.gmra.mrb[10].mxu0 %v1055_v51  ;;  %1209 = vmatmul.mubr.f32.vlgmr.msra.gmra.mrb[10].mxu1 %v1055_v51  ;;  %v1628_v60 = vmul.f32 %v2826_v10, %v1055_v51 }
 0x530   :  { %2138 = vmatpush1.bf16.msra.mxu0 %v2453_v9  ;;  %2170 = vmatpush1.bf16.msra.mxu1 %v2465_v13 }
 0x531   :  { %1640 = vadd.xlane.f32.xlu0 %v1628_v60  ;;  %2140 = vmatprep.subr.bf16.mxu0 %v2478_v17 }
 0x532   :  { %2172 = vmatprep.subr.bf16.mxu1 %v2480_v18  ;;  %1320 = vmatprep.mubr.f32.mxu0 %v3155_v15 }
 0x533   :  { %1391 = vmatprep.mubr.f32.mxu1 %v3155_v15 }
 0x534   :  { %2142 = vmatpush1.bf16.msra.mxu0 %v2492_v22  ;;  %2174 = vmatpush1.bf16.msra.mxu1 %v2505_v26 }
 0x535   :  { %2144 = vmatprep.subr.bf16.mxu0 %v2507_v27  ;;  %2176 = vmatprep.subr.bf16.mxu1 %v2518_v31 }
 0x538   :  { %2146 = vmatpush1.bf16.msra.mxu0 %v2530_v35  ;;  %2178 = vmatpush1.bf16.msra.mxu1 %v2543_v40 }
 0x539   :  { %2148 = vmatprep.subr.bf16.mxu0 %v2545_v41  ;;  %2180 = vmatprep.subr.bf16.mxu1 %v2557_v45 }
 0x53c   :  { %2150 = vmatpush1.bf16.msra.mxu0 %v2578_v52  ;;  %2182 = vmatpush1.bf16.msra.mxu1 %v2585_v54 }
 0x53d   :  { %2152 = vmatprep.subr.bf16.mxu0 %v2587_v55  ;;  %2184 = vmatprep.subr.bf16.mxu1 %v2599_v59 }
 0x540   :  { %2154 = vmatpush1.bf16.msra.mxu0 %v2617_v1  ;;  %2186 = vmatpush1.bf16.msra.mxu1 %v2622_v2 }
 0x541   :  { %2156 = vmatprep.subr.bf16.mxu0 %v2624_v5  ;;  %2188 = vmatprep.subr.bf16.mxu1 %v2636_v11 }
 0x544   :  { %2158 = vmatpush1.bf16.msra.mxu0 %v2657_v21  ;;  %2190 = vmatpush1.bf16.msra.mxu1 %v2664_v24 }
 0x545   :  { %2160 = vmatprep.subr.bf16.mxu0 %v2666_v25  ;;  %2192 = vmatprep.subr.bf16.mxu1 %v2680_v32 }
 0x548   :  { %2162 = vmatpush1.bf16.msra.mxu0 %v2699_v43  ;;  %2194 = vmatpush1.bf16.msra.mxu1 %v2704_v46 }
 0x549   :  { %2164 = vmatprep.subr.bf16.mxu0 %v2706_v47  ;;  %2196 = vmatprep.subr.bf16.mxu1 %v2715_v50 }
 0x54c   :  { %2166 = vmatpush1.bf16.msra.mxu0 %v2724_v57  ;;  %2198 = vmatpush1.bf16.msra.mxu1 %v2728_v58 }
 0x54d   :  { %2200 = vmatprep.subr.bf16.mxu0 %v2440_v4  ;;  %2232 = vmatprep.subr.bf16.mxu1 %v2451_v8  ;;  %v1072_v8 = vadd.f32 %v1068_v14, %v2811_v56 }
 0x602   :  { %v1139_v62 = vpop.f32.mrb[10].mxu0  ;;  %v1210_v7 = vpop.f32.mrb[10].mxu1 }
 0x603   :  { %v1140_v3 = vadd.f32 %v1139_v62, %v1069_v53  ;;  %v1141_v28 = vpop.f32.mrb[11].mxu0  ;;  %v1212_v39 = vpop.f32.mrb[11].mxu1  ;;  %v1211_v16 = vadd.f32 %v1210_v7, %v1071_v12 }
 0x604   :  { %v1142_v36 = vadd.f32 %v1141_v28, %v1070_v0  ;;  %v1213_v33 = vadd.f32 %v1212_v39, %v1072_v8  ;;  %v1430_v12 = vpop.xlane.xlu1 %1429 }
 0x605   :  { %v1739_v4 = vmul.f32 -1.442695, %v1140_v3 }
 0x606   :  { %v1740_v44 = vmul.f32 -1.442695, %v1142_v36  ;;  %v1741_v49 = vmul.f32 -1.442695, %v1213_v33 }
 0x607   :  { %2344 = vpow2.f32 %v1739_v4 }
 0x608   :  { %2346 = vpow2.f32 %v1740_v44 }
 0x609   :  { %2348 = vpow2.f32 %v1741_v49  ;;  %v1431_v49 = vmul.f32 %v1430_v12, %v2791_v20 }
 0x60a   :  { %2350 = vtanh.f32 %v1211_v16  ;;  %v1432_v16 = vmul.f32 %v1430_v12, %v2796_v29 }
 0x611   :  { %v2345_v6 = vpop.eup %2344 }
 0x612   :  { %v2347_v51 = vpop.eup %2346  ;;  %v1218_v60 = vadd.f32 1.0, %v2345_v6  ;;  %v1435_v6 = vadd.f32 %v1431_v49, %v2800_v34 }
 0x613   :  { %v1224_v42 = vadd.f32 1.0, %v2347_v51  ;;  %v2349_v63 = vpop.eup %2348  ;;  %v1436_v51 = vadd.f32 %v1432_v16, %v2803_v37 }
 0x614   :  { %2352 = vrcp.f32 %v1218_v60  ;;  %v2351_v53 = vpop.eup %2350  ;;  %v1231_v23 = vadd.f32 1.0, %v2349_v63  ;;  %v1434_v63 = vmul.f32 %v1430_v12, %v2805_v38 }
 0x615   :  { %2354 = vrcp.f32 %v1224_v42 }
 0x616   :  { %2356 = vrcp.f32 %v1231_v23 }
 0x61e   :  { %v2353_v0 = vpop.eup %2352 }
 0x61f   :  { %v2355_v62 = vpop.eup %2354  ;;  %v1235_v14 = vmul.f32 %v2353_v0, %v2351_v53 }
 0x620   :  { %v1234_v3 = vmul.f32 %v2355_v62, %v3029_v48  ;;  %v2357_v7 = vpop.eup %2356 }
 0x622   :  { %v3076_v28 = vadd.f32 %v1235_v14, %v1234_v3  ;;  %v1438_v3 = vadd.f32 %v1434_v63, %v2811_v56 }
 0x624   :  { %2358 = vtanh.f32 %v3076_v28 }
 0x62e   :  { %v2359_v39 = vpop.eup %2358 }
 0x62f   :  { %v1238_v36 = vmul.f32 %v2359_v39, %v2357_v7 }
 0x631   :  { %1321 = vmatmul.mubr.f32.vlgmr.msra.gmra.mrb[12].mxu0 %v1238_v36  ;;  %1392 = vmatmul.mubr.f32.vlgmr.msra.gmra.mrb[12].mxu1 %v1238_v36  ;;  %v1629_v4 = vmul.f32 %v2826_v10, %v1238_v36 }
 0x632   :  { %2202 = vmatpush1.bf16.msra.mxu0 %v2453_v9  ;;  %2234 = vmatpush1.bf16.msra.mxu1 %v2465_v13  ;;  %v1247_v9 = vpop.xlane.xlu0 %1246 }
 0x633   :  { %1642 = vadd.xlane.f32.xlu1 %v1629_v4  ;;  %2204 = vmatprep.subr.bf16.mxu0 %v2478_v17  ;;  %v1248_v13 = vmul.f32 %v1247_v9, %v2791_v20  ;;  %v1249_v17 = vmul.f32 %v1247_v9, %v2796_v29  ;;  %v1433_v20 = vmul.f32 %v1430_v12, %v2813_v61 }
 0x634   :  { %2236 = vmatprep.subr.bf16.mxu1 %v2480_v18  ;;  %1503 = vmatprep.mubr.f32.mxu0 %v3155_v15 }
 0x635   :  { %1574 = vmatprep.mubr.f32.mxu1 %v3155_v15  ;;  %v1252_v18 = vadd.f32 %v1248_v13, %v2800_v34  ;;  %v1437_v34 = vadd.f32 %v1433_v20, %v2817_v19 }
 0x636   :  { %2206 = vmatpush1.bf16.msra.mxu0 %v2492_v22  ;;  %2238 = vmatpush1.bf16.msra.mxu1 %v2505_v26  ;;  %v1253_v22 = vadd.f32 %v1249_v17, %v2803_v37 }
 0x637   :  { %2208 = vmatprep.subr.bf16.mxu0 %v2507_v27  ;;  %2240 = vmatprep.subr.bf16.mxu1 %v2518_v31  ;;  %v1251_v31 = vmul.f32 %v1247_v9, %v2805_v38 }
 0x63a   :  { %2210 = vmatpush1.bf16.msra.mxu0 %v2530_v35  ;;  %2242 = vmatpush1.bf16.msra.mxu1 %v2543_v40 }
 0x63b   :  { %2212 = vmatprep.subr.bf16.mxu0 %v2545_v41  ;;  %2244 = vmatprep.subr.bf16.mxu1 %v2557_v45 }
 0x63e   :  { %2214 = vmatpush1.bf16.msra.mxu0 %v2578_v52  ;;  %2246 = vmatpush1.bf16.msra.mxu1 %v2585_v54 }
 0x63f   :  { %2216 = vmatprep.subr.bf16.mxu0 %v2587_v55  ;;  %2248 = vmatprep.subr.bf16.mxu1 %v2599_v59  ;;  %v1255_v55 = vadd.f32 %v1251_v31, %v2811_v56  ;;  %v1250_v59 = vmul.f32 %v1247_v9, %v2813_v61  ;;  %v2392_v31 = vld [vmem:[%s3146_s4] ss:$0 sm:$0xff] }
 0x642   :  { %2218 = vmatpush1.bf16.msra.mxu0 %v2617_v1  ;;  %2250 = vmatpush1.bf16.msra.mxu1 %v2622_v2  ;;  %v1254_v2 = vadd.f32 %v1250_v59, %v2817_v19 }
 0x643   :  { %2220 = vmatprep.subr.bf16.mxu0 %v2624_v5  ;;  %2252 = vmatprep.subr.bf16.mxu1 %v2636_v11 }
 0x646   :  { %2222 = vmatpush1.bf16.msra.mxu0 %v2657_v21  ;;  %2254 = vmatpush1.bf16.msra.mxu1 %v2664_v24 }
 0x647   :  { %2224 = vmatprep.subr.bf16.mxu0 %v2666_v25  ;;  %2256 = vmatprep.subr.bf16.mxu1 %v2680_v32 }
 0x64a   :  { %2226 = vmatpush1.bf16.msra.mxu0 %v2699_v43  ;;  %2258 = vmatpush1.bf16.msra.mxu1 %v2704_v46 }
 0x64b   :  { %2228 = vmatprep.subr.bf16.mxu0 %v2706_v47  ;;  %2260 = vmatprep.subr.bf16.mxu1 %v2715_v50 }
 0x64e   :  { %2230 = vmatpush1.bf16.msra.mxu0 %v2724_v57  ;;  %2262 = vmatpush1.bf16.msra.mxu1 %v2728_v58 }
 0x704   :  { %v1322_v26 = vpop.f32.mrb[12].mxu0  ;;  %v1393_v27 = vpop.f32.mrb[12].mxu1 }
 0x705   :  { %v1323_v35 = vadd.f32 %v1322_v26, %v1252_v18  ;;  %v1324_v40 = vpop.f32.mrb[13].mxu0  ;;  %v1395_v41 = vpop.f32.mrb[13].mxu1  ;;  %v1394_v11 = vadd.f32 %v1393_v27, %v1254_v2 }
 0x706   :  { %v1325_v45 = vadd.f32 %v1324_v40, %v1253_v22  ;;  %v1396_v1 = vadd.f32 %v1395_v41, %v1255_v55  ;;  %v1633_v40 = vpop.xlane.xlu0 %1632  ;;  %v1635_v41 = vpop.xlane.xlu1 %1634  ;;  %v1649_v55 = vstv %s3147_s5 }
 0x707   :  { %v1743_v52 = vmul.f32 -1.442695, %v1323_v35  ;;  %v1651_v59 = vadd.f32 %v1649_v55, %v1635_v41 }
 0x708   :  { %v1744_v54 = vmul.f32 -1.442695, %v1325_v45  ;;  %v1745_v5 = vmul.f32 -1.442695, %v1396_v1 }
 0x709   :  { %2360 = vpow2.f32 %v1743_v52 }
 0x70a   :  { %2362 = vpow2.f32 %v1744_v54  ;;  %v1637_v45 = vpop.xlane.xlu0 %1636  ;;  %v1639_v52 = vpop.xlane.xlu1 %1638 }
 0x70b   :  { %2364 = vpow2.f32 %v1745_v5  ;;  %v1652_v1 = vadd.f32 %v1649_v55, %v1637_v45  ;;  %v3156_v5 = vld [vmem:[#allocation7_spill] sm:$0xff] }
 0x70c   :  { %2366 = vtanh.f32 %v1394_v11  ;;  %v3157_v11 = vld [vmem:[#allocation6_spill] sm:$0xff] }
 0x70e   :  { %v1641_v54 = vpop.xlane.xlu0 %1640  ;;  %v1643_v2 = vpop.xlane.xlu1 %1642 }
 0x713   :  { %v2361_v21 = vpop.eup %2360 }
 0x714   :  { %v2363_v24 = vpop.eup %2362  ;;  %v1401_v25 = vadd.f32 1.0, %v2361_v21  ;;  %v1668_v21 = vsub.s32 %v3157_v11, %v3156_v5 }
 0x715   :  { %v1407_v32 = vadd.f32 1.0, %v2363_v24  ;;  %v2365_v43 = vpop.eup %2364  ;;  %v1650_v24 = vadd.f32 %v1649_v55, %v1633_v40 }
 0x716   :  { %2368 = vrcp.f32 %v1401_v25  ;;  %v2367_v46 = vpop.eup %2366  ;;  %v1414_v58 = vadd.f32 1.0, %v2365_v43  ;;  %v1653_v25 = vadd.f32 %v1649_v55, %v1639_v52  ;;  %v1654_v43 = vadd.f32 %v1649_v55, %v1641_v54 }
 0x717   :  { %2370 = vrcp.f32 %v1407_v32 }
 0x718   :  { %2372 = vrcp.f32 %v1414_v58  ;;  %v1669_v58 = vrot.slane %v1650_v24, %v1668_v21 }
 0x720   :  { %v2369_v47 = vpop.eup %2368 }
 0x721   :  { %v2371_v50 = vpop.eup %2370  ;;  %v1418_v57 = vmul.f32 %v2369_v47, %v2367_v46  ;;  %v1673_v46 = vrot.slane %v1651_v59, %v1668_v21  ;;  %v1655_v47 = vadd.f32 %v1649_v55, %v1643_v2 }
 0x722   :  { %v1417_v15 = vmul.f32 %v2371_v50, %v3076_v28  ;;  %v2373_v44 = vpop.eup %2372  ;;  %v1677_v50 = vrot.slane %v1652_v1, %v1668_v21 }
 0x724   :  { %v1419_v48 = vadd.f32 %v1418_v57, %v1417_v15  ;;  %v1681_v15 = vrot.slane %v1653_v25, %v1668_v21 }
 0x726   :  { %2374 = vtanh.f32 %v1419_v48 }
 0x730   :  { %v2375_v8 = vpop.eup %2374 }
 0x731   :  { %v1421_v30 = vmul.f32 %v2375_v8, %v2373_v44  ;;  %v1699_v44 = vsel %vm1698_vm9, %v1673_v46, %v1669_v58  ;;  %v1689_v8 = vrot.slane %v1655_v47, %v1668_v21 }
 0x733   :  { %1504 = vmatmul.mubr.f32.vlgmr.msra.gmra.mrb[14].mxu0 %v1421_v30  ;;  %1575 = vmatmul.mubr.f32.vlgmr.msra.gmra.mrb[14].mxu1 %v1421_v30  ;;  %v1630_v33 = vmul.f32 %v2826_v10, %v1421_v30  ;;  %v1701_v30 = vsel %vm1700_vm10, %v1677_v50, %v1699_v44 }
 0x734   :  { %v1703_v49 = vsel %vm1702_vm11, %v1681_v15, %v1701_v30 }
 0x735   :  { %1644 = vadd.xlane.f32.xlu0 %v1630_v33 }
 0x7c2   :  { %v1645_v32 = vpop.xlane.xlu0 %1644 }
 0x7c3   :  { %v1656_v57 = vadd.f32 %v1649_v55, %v1645_v32 }
 0x7c5   :  { %v1693_v33 = vrot.slane %v1656_v57, %v1668_v21 }
 0x806   :  { %v1505_v60 = vpop.f32.mrb[14].mxu0  ;;  %v1576_v42 = vpop.f32.mrb[14].mxu1 }
 0x807   :  { %v1506_v53 = vadd.f32 %v1505_v60, %v1435_v6  ;;  %v1507_v0 = vpop.f32.mrb[15].mxu0  ;;  %v1578_v62 = vpop.f32.mrb[15].mxu1  ;;  %v1577_v28 = vadd.f32 %v1576_v42, %v1437_v34 }
 0x808   :  { %v1508_v14 = vadd.f32 %v1507_v0, %v1436_v51  ;;  %v1579_v29 = vadd.f32 %v1578_v62, %v1438_v3 }
 0x809   :  { %v1747_v23 = vmul.f32 -1.442695, %v1506_v53 }
 0x80a   :  { %v1748_v10 = vmul.f32 -1.442695, %v1508_v14  ;;  %v1749_v37 = vmul.f32 -1.442695, %v1579_v29 }
 0x80b   :  { %2376 = vpow2.f32 %v1747_v23 }
 0x80c   :  { %2378 = vpow2.f32 %v1748_v10 }
 0x80d   :  { %2380 = vpow2.f32 %v1749_v37 }
 0x80e   :  { %2382 = vtanh.f32 %v1577_v28 }
 0x815   :  { %v2377_v7 = vpop.eup %2376 }
 0x816   :  { %v2379_v39 = vpop.eup %2378  ;;  %v1584_v38 = vadd.f32 1.0, %v2377_v7 }
 0x817   :  { %v1590_v36 = vadd.f32 1.0, %v2379_v39  ;;  %v2381_v4 = vpop.eup %2380 }
 0x818   :  { %2384 = vrcp.f32 %v1584_v38  ;;  %v2383_v9 = vpop.eup %2382  ;;  %v1597_v61 = vadd.f32 1.0, %v2381_v4 }
 0x819   :  { %2386 = vrcp.f32 %v1590_v36 }
 0x81a   :  { %2388 = vrcp.f32 %v1597_v61 }
 0x822   :  { %v2385_v56 = vpop.eup %2384 }
 0x823   :  { %v2387_v13 = vpop.eup %2386  ;;  %v1601_v17 = vmul.f32 %v2385_v56, %v2383_v9 }
 0x824   :  { %v1600_v18 = vmul.f32 %v2387_v13, %v1419_v48  ;;  %v2389_v19 = vpop.eup %2388  ;;  %v1685_v48 = vrot.slane %v1654_v43, %v1668_v21 }
 0x826   :  { %v1602_v22 = vadd.f32 %v1601_v17, %v1600_v18  ;;  %v1705_v6 = vsel %vm1704_vm12, %v1685_v48, %v1703_v49 }
 0x827   :  { %v1707_v51 = vsel %vm1706_vm13, %v1689_v8, %v1705_v6 }
 0x828   :  { %2390 = vtanh.f32 %v1602_v22  ;;  %v1709_v42 = vsel %vm1708_vm14, %v1693_v33, %v1707_v51 }
 0x832   :  { %v2391_v26 = vpop.eup %2390 }
 0x833   :  { %v1604_v27 = vmul.f32 %v2391_v26, %v2389_v19 }
 0x835   :  { %v1631_v35 = vmul.f32 %v2392_v31, %v1604_v27 }
 0x837   :  { %1646 = vadd.xlane.f32.xlu1 %v1631_v35 }
 0x8c4   :  { %v1647_v12 = vpop.xlane.xlu1 %1646 }
 0x8c5   :  { %v1657_v16 = vadd.f32 %v1649_v55, %v1647_v12 }
 0x8c7   :  { %v1697_v60 = vrot.slane %v1657_v16, %v1668_v21 }
 0x8c9   :  { %v1711_v63 = vsel %vm1710_vm15, %v1697_v60, %v1709_v42 }
 0x8ca   :  { %1713 = vst.msk [vmem:[%s3148_s6] sm:$0xff] %vm105_vm1, %v1711_v63 }

</bundles_post_ra>
